<compile_context>
chip_gen: v6e
topology: v6e:2x2x1
jax: 0.10.0
libtpu: 0.0.40
codegen_flags: <defaults>
</compile_context>

<pallas_src>
import functools

import jax
import jax.numpy as jnp
from jax.experimental import pallas as pl
from jax.experimental.pallas import tpu as pltpu


def _cdiv(a, b):
    return (a + b - 1) // b


def _round_up(x, m):
    return ((x + m - 1) // m) * m


def _tpu_flavor():
    """Returns (tensorcores_per_chip, activation dtype), robust to API drift."""
    kind = ""
    try:
        kind = (jax.devices()[0].device_kind or "").lower()
    except Exception:
        pass
    num_cores = 1
    try:
        info = pltpu.get_tpu_info()
        for attr in ("num_cores", "core_count", "tensorcore_count", "num_tensorcores"):
            v = getattr(info, attr, None)
            if isinstance(v, int) and v >= 1:
                num_cores = v
                break
    except Exception:
        pass
    if num_cores == 1 and "7" in kind:
        num_cores = 2                      # v7x: 2 TensorCores per chip
    num_cores = max(1, min(num_cores, 2))
    # bf16 element-wise math is native on v6e / v7x; keep f32 on v5e & older.
    legacy = any(t in kind for t in ("v2", "v3", "v4", "v5"))
    act_dtype = jnp.float32 if legacy else jnp.bfloat16
    return num_cores, act_dtype


def _select_batch_tiling(B, num_cores, max_tb):
    """Pick (tile_rows, n_grid_steps) minimising padded-row waste."""
    n_steps = _cdiv(B, max_tb)
    if num_cores > 1 and B >= 256:
        # Use every TensorCore (grid axis is "parallel"); keep steps balanced.
        n_steps = _round_up(max(n_steps, num_cores), num_cores)
    if n_steps <= 1:
        return B, 1                        # single full-batch block
    tb = _round_up(_cdiv(B, n_steps), 8)   # sublane-aligned tile
    n_steps = _cdiv(B, tb)
    if n_steps <= 1:
        return B, 1
    return tb, n_steps


def _decoder_kernel(ts_dim, bias_slices, act_dtype,
                    z_ref, mean_ref, std_ref, bias_ref, *rest):
    """Fused 7x(Linear [+ LeakyReLU(0.2)]) + de-normalization (x*std + mean).

    Matmuls run on the MXU in bf16 with f32 accumulation.  Inter-layer
    activations stay in `act_dtype` (bf16 on v6e/v7x, f32 on v5e).
    """
    out_ref = rest[-1]
    w_refs = rest[:-1]
    n_layers = len(w_refs)

    h = z_ref[...].astype(jnp.bfloat16)
    acc = None
    for li in range(n_layers):
        off, width = bias_slices[li]
        b = bias_ref[:, off:off + width]                        # (1, width) f32
        acc = jnp.dot(h, w_refs[li][...],
                      preferred_element_type=jnp.float32) + b   # f32 accumulate
        if li < n_layers - 1:
            a = acc.astype(act_dtype)
            a = jnp.where(a > 0, a, 0.2 * a)                    # LeakyReLU(0.2)
            h = a.astype(jnp.bfloat16)

    res = acc * std_ref[...] + mean_ref[...]                    # f32 de-norm
    if out_ref.shape[-1] == ts_dim:
        out_ref[...] = res.astype(out_ref.dtype)
    else:
        # Output block is padded to 128 lanes (lane-dense HBM writeback);
        # write the valid lanes, zero the padding lanes.
        out_ref[...] = jnp.zeros_like(out_ref)
        out_ref[:, :ts_dim] = res.astype(out_ref.dtype)


def make_params(ts_dim, output_dim, key):
    """Deterministic PyTorch-style init: U(-1/sqrt(fan_in), 1/sqrt(fan_in))."""
    dims = [output_dim, 128, 256, 512, 512, 256, 128, ts_dim]
    params = []
    for i in range(len(dims) - 1):
        fan_in, fan_out = dims[i], dims[i + 1]
        key, kw, kb = jax.random.split(key, 3)
        bound = 1.0 / jnp.sqrt(fan_in)
        w = jax.random.uniform(kw, (fan_in, fan_out), jnp.float32, -bound, bound)
        b = jax.random.uniform(kb, (1, fan_out), jnp.float32, -bound, bound)
        params += [w, b]
    return params


@functools.partial(jax.jit, static_argnames=("max_tb",))
def tsvae_decoder(z, x_mean, x_std, params, *, max_tb=1024):
    B, d_in = z.shape
    ts_dim = int(x_mean.shape[-1])
    ts_pad = _round_up(ts_dim, 128)          # lane-dense output block width
    n_layers = len(params) // 2

    num_cores, act_dtype = _tpu_flavor()
    tb, n_steps = _select_batch_tiling(B, num_cores, max_tb)

    # bf16 weights (MXU-native, halves weight DMA); all biases concatenated
    # into a single f32 (1, sum_widths) input (every slice offset is 128-aligned).
    ws = [params[2 * i].astype(jnp.bfloat16) for i in range(n_layers)]
    bias_list = [params[2 * i + 1].reshape(1, -1).astype(jnp.float32)
                 for i in range(n_layers)]
    widths = [int(b.shape[-1]) for b in bias_list]
    off, bias_slices = 0, []
    for w_ in widths:
        bias_slices.append((off, w_))
        off += w_
    bias_slices = tuple(bias_slices)
    b_all = jnp.concatenate(bias_list, axis=-1)

    kernel = functools.partial(_decoder_kernel, ts_dim, bias_slices, act_dtype)

    flops = 2 * B * sum(int(w.shape[0]) * int(w.shape[1]) for w in ws)
    bytes_accessed = (sum(int(w.size) * 2 for w in ws) + int(b_all.size) * 4
                      + B * (d_in + 2 * ts_dim + ts_pad) * 4)
    cost = pl.CostEstimate(flops=flops, transcendentals=0,
                           bytes_accessed=int(bytes_accessed))

    # z / x_mean / x_std stay unpadded (block last dim == full array dim, which
    # is legal); non-divisible batch tiles use Pallas partial last blocks, so
    # no wrapper-side padding / extra HBM round trips.  Weights & biases are
    # whole-array blocks revisited every step (fetched once, kept resident).
    # TODO(synk): single-buffer the constant param blocks (pl.Buffered(1)) once
    # pipeline_mode support is confirmed on all target toolchains.
    grid_spec = pltpu.PrefetchScalarGridSpec(
        num_scalar_prefetch=0,
        grid=(n_steps,),
        in_specs=[pl.BlockSpec((tb, d_in), lambda i: (i, 0)),
                  pl.BlockSpec((tb, ts_dim), lambda i: (i, 0)),
                  pl.BlockSpec((tb, ts_dim), lambda i: (i, 0)),
                  pl.BlockSpec(b_all.shape, lambda i: (0, 0))]
                 + [pl.BlockSpec(w.shape, lambda i: (0, 0)) for w in ws],
        out_specs=pl.BlockSpec((tb, ts_pad), lambda i: (i, 0)),
    )

    out = pl.pallas_call(
        kernel,
        out_shape=jax.ShapeDtypeStruct((B, ts_pad), z.dtype),
        grid_spec=grid_spec,
        cost_estimate=cost,
        compiler_params=pltpu.CompilerParams(
            dimension_semantics=("parallel",),
            vmem_limit_bytes=32 * 1024 * 1024),
    )(z, x_mean, x_std, b_all, *ws)

    return out[:, :ts_dim] if ts_pad != ts_dim else out


def _reference_f32(z, x_mean, x_std, params):
    h = z
    n_layers = len(params) // 2
    for i in range(n_layers):
        w, b = params[2 * i], params[2 * i + 1]
        h = h @ w + b
        if i < n_layers - 1:
            h = jnp.where(h > 0, h, 0.2 * h)
    return h * x_std + x_mean


def _reference_kernel_precision(z, x_mean, x_std, params, act_dtype):
    """Same math as the kernel: bf16 matmul inputs, f32 accumulate, act_dtype acts."""
    n_layers = len(params) // 2
    h = z.astype(jnp.bfloat16)
    acc = None
    for i in range(n_layers):
        w = params[2 * i].astype(jnp.bfloat16)
        b = params[2 * i + 1].astype(jnp.float32)
        acc = jnp.dot(h, w, preferred_element_type=jnp.float32) + b
        if i < n_layers - 1:
            a = acc.astype(act_dtype)
            a = jnp.where(a > 0, a, 0.2 * a)
            h = a.astype(jnp.bfloat16)
    return acc * x_std + x_mean


if __name__ == "__main__":
    output_dim = 16   # latent dim (decoder input)
    ts_dim = 24       # time-series output dim

    key = jax.random.PRNGKey(0)
    kp, key = jax.random.split(key)
    params = make_params(ts_dim, output_dim, kp)

    _, act_dtype = _tpu_flavor()

    # (B, max_tb) cases:
    #   (8, 1024)   -> single-step path
    #   (300, 1024) -> single step on 1-TC chips, 2 parallel steps on v7x
    #   (300, 128)  -> multi-step gridded path with a partial last tile
    for B, max_tb in ((8, 1024), (300, 1024), (300, 128)):
        kz, km, ks, key = jax.random.split(key, 4)
        z = jax.random.normal(kz, (B, output_dim), jnp.float32)
        x_mean = jax.random.normal(km, (B, ts_dim), jnp.float32)
        x_std = jax.random.uniform(ks, (B, ts_dim), jnp.float32, 0.5, 1.5)

        out = jax.block_until_ready(
            tsvae_decoder(z, x_mean, x_std, params, max_tb=max_tb))
        assert out.shape == (B, ts_dim), out.shape

        ref_k = _reference_kernel_precision(z, x_mean, x_std, params, act_dtype)
        ref_f = _reference_f32(z, x_mean, x_std, params)
        assert jnp.allclose(out, ref_k, atol=2e-2, rtol=2e-2), \
            f"mismatch vs kernel-precision reference (B={B}, max_tb={max_tb})"
        assert jnp.allclose(out, ref_f, atol=1e-1, rtol=1e-1), \
            f"mismatch vs f32 reference (B={B}, max_tb={max_tb})"

    print("KERNEL_OK")
</pallas_src>

<mosaic_0001>
module attributes {stable_mosaic.version = 11 : i64} {
  func.func @_decoder_kernel(%arg0: i32, %arg1: memref<8x16xf32, #tpu.memory_space<vmem>>, %arg2: memref<8x24xf32, #tpu.memory_space<vmem>>, %arg3: memref<8x24xf32, #tpu.memory_space<vmem>>, %arg4: memref<1x1816xf32, #tpu.memory_space<vmem>>, %arg5: memref<16x128xbf16, #tpu.memory_space<vmem>>, %arg6: memref<128x256xbf16, #tpu.memory_space<vmem>>, %arg7: memref<256x512xbf16, #tpu.memory_space<vmem>>, %arg8: memref<512x512xbf16, #tpu.memory_space<vmem>>, %arg9: memref<512x256xbf16, #tpu.memory_space<vmem>>, %arg10: memref<256x128xbf16, #tpu.memory_space<vmem>>, %arg11: memref<128x24xbf16, #tpu.memory_space<vmem>>, %arg12: memref<8x128xf32, #tpu.memory_space<vmem>>) attributes {dimension_semantics = [#tpu.dimension_semantics<parallel>], iteration_bounds = array<i64: 1>, scalar_prefetch = 0 : i64, scratch_operands = 0 : i64, tpu.core_type = #tpu.core_type<tc>, window_params = [{transform_indices = @transform_0, window_bounds = array<i64: 8, 16>}, {transform_indices = @transform_1, window_bounds = array<i64: 8, 24>}, {transform_indices = @transform_2, window_bounds = array<i64: 8, 24>}, {pipeline_mode = #tpu.pipeline_mode<synchronous>, transform_indices = @transform_3, window_bounds = array<i64: 1, 1816>}, {pipeline_mode = #tpu.pipeline_mode<synchronous>, transform_indices = @transform_4, window_bounds = array<i64: 16, 128>}, {pipeline_mode = #tpu.pipeline_mode<synchronous>, transform_indices = @transform_5, window_bounds = array<i64: 128, 256>}, {pipeline_mode = #tpu.pipeline_mode<synchronous>, transform_indices = @transform_6, window_bounds = array<i64: 256, 512>}, {pipeline_mode = #tpu.pipeline_mode<synchronous>, transform_indices = @transform_7, window_bounds = array<i64: 512, 512>}, {pipeline_mode = #tpu.pipeline_mode<synchronous>, transform_indices = @transform_8, window_bounds = array<i64: 512, 256>}, {pipeline_mode = #tpu.pipeline_mode<synchronous>, transform_indices = @transform_9, window_bounds = array<i64: 256, 128>}, {pipeline_mode = #tpu.pipeline_mode<synchronous>, transform_indices = @transform_10, window_bounds = array<i64: 128, 24>}, {transform_indices = @transform_11, window_bounds = array<i64: 8, 128>}]} {
    %c0 = arith.constant 0 : index
    %c0_0 = arith.constant 0 : index
    %0 = vector.load %arg1[%c0, %c0_0] : memref<8x16xf32, #tpu.memory_space<vmem>>, vector<8x16xf32>
    %1 = arith.truncf %0 : vector<8x16xf32> to vector<8x16xbf16>
    %c0_1 = arith.constant 0 : index
    %c0_2 = arith.constant 0 : index
    %2 = vector.load %arg4[%c0_1, %c0_2] : memref<1x1816xf32, #tpu.memory_space<vmem>>, vector<1x128xf32>
    %c0_3 = arith.constant 0 : index
    %c0_4 = arith.constant 0 : index
    %3 = vector.load %arg5[%c0_3, %c0_4] : memref<16x128xbf16, #tpu.memory_space<vmem>>, vector<16x128xbf16>
    %cst = arith.constant dense<0.000000e+00> : vector<8x128xf32>
    %4 = tpu.matmul %1, %3, %cst {dimension_numbers = #tpu.dot_dimension_numbers<[1], [0], [0], [1], [0, 0, 1, 1], [], []>} : vector<8x16xbf16>, vector<16x128xbf16>, vector<8x128xf32> -> vector<8x128xf32>
    %5 = vector.broadcast %2 : vector<1x128xf32> to vector<8x128xf32>
    %6 = arith.addf %4, %5 : vector<8x128xf32>
    %7 = arith.truncf %6 : vector<8x128xf32> to vector<8x128xbf16>
    %cst_5 = arith.constant 0.000000e+00 : bf16
    %8 = vector.broadcast %cst_5 : bf16 to vector<8x128xbf16>
    %9 = arith.cmpf ogt, %7, %8 : vector<8x128xbf16>
    %cst_6 = arith.constant 2.001950e-01 : bf16
    %10 = vector.broadcast %cst_6 : bf16 to vector<8x128xbf16>
    %11 = arith.mulf %10, %7 : vector<8x128xbf16>
    %12 = arith.select %9, %7, %11 : vector<8x128xi1>, vector<8x128xbf16>
    %c0_7 = arith.constant 0 : index
    %c128 = arith.constant 128 : index
    %13 = vector.load %arg4[%c0_7, %c128] : memref<1x1816xf32, #tpu.memory_space<vmem>>, vector<1x256xf32>
    %c0_8 = arith.constant 0 : index
    %c0_9 = arith.constant 0 : index
    %14 = vector.load %arg6[%c0_8, %c0_9] : memref<128x256xbf16, #tpu.memory_space<vmem>>, vector<128x256xbf16>
    %cst_10 = arith.constant dense<0.000000e+00> : vector<8x256xf32>
    %15 = tpu.matmul %12, %14, %cst_10 {dimension_numbers = #tpu.dot_dimension_numbers<[1], [0], [0], [1], [0, 0, 1, 1], [], []>} : vector<8x128xbf16>, vector<128x256xbf16>, vector<8x256xf32> -> vector<8x256xf32>
    %16 = vector.broadcast %13 : vector<1x256xf32> to vector<8x256xf32>
    %17 = arith.addf %15, %16 : vector<8x256xf32>
    %18 = arith.truncf %17 : vector<8x256xf32> to vector<8x256xbf16>
    %cst_11 = arith.constant 0.000000e+00 : bf16
    %19 = vector.broadcast %cst_11 : bf16 to vector<8x256xbf16>
    %20 = arith.cmpf ogt, %18, %19 : vector<8x256xbf16>
    %cst_12 = arith.constant 2.001950e-01 : bf16
    %21 = vector.broadcast %cst_12 : bf16 to vector<8x256xbf16>
    %22 = arith.mulf %21, %18 : vector<8x256xbf16>
    %23 = arith.select %20, %18, %22 : vector<8x256xi1>, vector<8x256xbf16>
    %c0_13 = arith.constant 0 : index
    %c384 = arith.constant 384 : index
    %24 = vector.load %arg4[%c0_13, %c384] : memref<1x1816xf32, #tpu.memory_space<vmem>>, vector<1x512xf32>
    %c0_14 = arith.constant 0 : index
    %c0_15 = arith.constant 0 : index
    %25 = vector.load %arg7[%c0_14, %c0_15] : memref<256x512xbf16, #tpu.memory_space<vmem>>, vector<256x512xbf16>
    %cst_16 = arith.constant dense<0.000000e+00> : vector<8x512xf32>
    %26 = tpu.matmul %23, %25, %cst_16 {dimension_numbers = #tpu.dot_dimension_numbers<[1], [0], [0], [1], [0, 0, 1, 1], [], []>} : vector<8x256xbf16>, vector<256x512xbf16>, vector<8x512xf32> -> vector<8x512xf32>
    %27 = vector.broadcast %24 : vector<1x512xf32> to vector<8x512xf32>
    %28 = arith.addf %26, %27 : vector<8x512xf32>
    %29 = arith.truncf %28 : vector<8x512xf32> to vector<8x512xbf16>
    %cst_17 = arith.constant 0.000000e+00 : bf16
    %30 = vector.broadcast %cst_17 : bf16 to vector<8x512xbf16>
    %31 = arith.cmpf ogt, %29, %30 : vector<8x512xbf16>
    %cst_18 = arith.constant 2.001950e-01 : bf16
    %32 = vector.broadcast %cst_18 : bf16 to vector<8x512xbf16>
    %33 = arith.mulf %32, %29 : vector<8x512xbf16>
    %34 = arith.select %31, %29, %33 : vector<8x512xi1>, vector<8x512xbf16>
    %c0_19 = arith.constant 0 : index
    %c896 = arith.constant 896 : index
    %35 = vector.load %arg4[%c0_19, %c896] : memref<1x1816xf32, #tpu.memory_space<vmem>>, vector<1x512xf32>
    %c0_20 = arith.constant 0 : index
    %c0_21 = arith.constant 0 : index
    %36 = vector.load %arg8[%c0_20, %c0_21] : memref<512x512xbf16, #tpu.memory_space<vmem>>, vector<512x512xbf16>
    %cst_22 = arith.constant dense<0.000000e+00> : vector<8x512xf32>
    %37 = tpu.matmul %34, %36, %cst_22 {dimension_numbers = #tpu.dot_dimension_numbers<[1], [0], [0], [1], [0, 0, 1, 1], [], []>} : vector<8x512xbf16>, vector<512x512xbf16>, vector<8x512xf32> -> vector<8x512xf32>
    %38 = vector.broadcast %35 : vector<1x512xf32> to vector<8x512xf32>
    %39 = arith.addf %37, %38 : vector<8x512xf32>
    %40 = arith.truncf %39 : vector<8x512xf32> to vector<8x512xbf16>
    %cst_23 = arith.constant 0.000000e+00 : bf16
    %41 = vector.broadcast %cst_23 : bf16 to vector<8x512xbf16>
    %42 = arith.cmpf ogt, %40, %41 : vector<8x512xbf16>
    %cst_24 = arith.constant 2.001950e-01 : bf16
    %43 = vector.broadcast %cst_24 : bf16 to vector<8x512xbf16>
    %44 = arith.mulf %43, %40 : vector<8x512xbf16>
    %45 = arith.select %42, %40, %44 : vector<8x512xi1>, vector<8x512xbf16>
    %c0_25 = arith.constant 0 : index
    %c1408 = arith.constant 1408 : index
    %46 = vector.load %arg4[%c0_25, %c1408] : memref<1x1816xf32, #tpu.memory_space<vmem>>, vector<1x256xf32>
    %c0_26 = arith.constant 0 : index
    %c0_27 = arith.constant 0 : index
    %47 = vector.load %arg9[%c0_26, %c0_27] : memref<512x256xbf16, #tpu.memory_space<vmem>>, vector<512x256xbf16>
    %cst_28 = arith.constant dense<0.000000e+00> : vector<8x256xf32>
    %48 = tpu.matmul %45, %47, %cst_28 {dimension_numbers = #tpu.dot_dimension_numbers<[1], [0], [0], [1], [0, 0, 1, 1], [], []>} : vector<8x512xbf16>, vector<512x256xbf16>, vector<8x256xf32> -> vector<8x256xf32>
    %49 = vector.broadcast %46 : vector<1x256xf32> to vector<8x256xf32>
    %50 = arith.addf %48, %49 : vector<8x256xf32>
    %51 = arith.truncf %50 : vector<8x256xf32> to vector<8x256xbf16>
    %cst_29 = arith.constant 0.000000e+00 : bf16
    %52 = vector.broadcast %cst_29 : bf16 to vector<8x256xbf16>
    %53 = arith.cmpf ogt, %51, %52 : vector<8x256xbf16>
    %cst_30 = arith.constant 2.001950e-01 : bf16
    %54 = vector.broadcast %cst_30 : bf16 to vector<8x256xbf16>
    %55 = arith.mulf %54, %51 : vector<8x256xbf16>
    %56 = arith.select %53, %51, %55 : vector<8x256xi1>, vector<8x256xbf16>
    %c0_31 = arith.constant 0 : index
    %c1664 = arith.constant 1664 : index
    %57 = vector.load %arg4[%c0_31, %c1664] : memref<1x1816xf32, #tpu.memory_space<vmem>>, vector<1x128xf32>
    %c0_32 = arith.constant 0 : index
    %c0_33 = arith.constant 0 : index
    %58 = vector.load %arg10[%c0_32, %c0_33] : memref<256x128xbf16, #tpu.memory_space<vmem>>, vector<256x128xbf16>
    %cst_34 = arith.constant dense<0.000000e+00> : vector<8x128xf32>
    %59 = tpu.matmul %56, %58, %cst_34 {dimension_numbers = #tpu.dot_dimension_numbers<[1], [0], [0], [1], [0, 0, 1, 1], [], []>} : vector<8x256xbf16>, vector<256x128xbf16>, vector<8x128xf32> -> vector<8x128xf32>
    %60 = vector.broadcast %57 : vector<1x128xf32> to vector<8x128xf32>
    %61 = arith.addf %59, %60 : vector<8x128xf32>
    %62 = arith.truncf %61 : vector<8x128xf32> to vector<8x128xbf16>
    %cst_35 = arith.constant 0.000000e+00 : bf16
    %63 = vector.broadcast %cst_35 : bf16 to vector<8x128xbf16>
    %64 = arith.cmpf ogt, %62, %63 : vector<8x128xbf16>
    %cst_36 = arith.constant 2.001950e-01 : bf16
    %65 = vector.broadcast %cst_36 : bf16 to vector<8x128xbf16>
    %66 = arith.mulf %65, %62 : vector<8x128xbf16>
    %67 = arith.select %64, %62, %66 : vector<8x128xi1>, vector<8x128xbf16>
    %c0_37 = arith.constant 0 : index
    %c1792 = arith.constant 1792 : index
    %68 = vector.load %arg4[%c0_37, %c1792] : memref<1x1816xf32, #tpu.memory_space<vmem>>, vector<1x24xf32>
    %c0_38 = arith.constant 0 : index
    %c0_39 = arith.constant 0 : index
    %69 = vector.load %arg11[%c0_38, %c0_39] : memref<128x24xbf16, #tpu.memory_space<vmem>>, vector<128x24xbf16>
    %cst_40 = arith.constant dense<0.000000e+00> : vector<8x24xf32>
    %70 = tpu.matmul %67, %69, %cst_40 {dimension_numbers = #tpu.dot_dimension_numbers<[1], [0], [0], [1], [0, 0, 1, 1], [], []>} : vector<8x128xbf16>, vector<128x24xbf16>, vector<8x24xf32> -> vector<8x24xf32>
    %71 = vector.broadcast %68 : vector<1x24xf32> to vector<8x24xf32>
    %72 = arith.addf %70, %71 : vector<8x24xf32>
    %c0_41 = arith.constant 0 : index
    %c0_42 = arith.constant 0 : index
    %73 = vector.load %arg3[%c0_41, %c0_42] : memref<8x24xf32, #tpu.memory_space<vmem>>, vector<8x24xf32>
    %74 = arith.mulf %72, %73 : vector<8x24xf32>
    %c0_43 = arith.constant 0 : index
    %c0_44 = arith.constant 0 : index
    %75 = vector.load %arg2[%c0_43, %c0_44] : memref<8x24xf32, #tpu.memory_space<vmem>>, vector<8x24xf32>
    %76 = arith.addf %74, %75 : vector<8x24xf32>
    %cst_45 = arith.constant 0.000000e+00 : f32
    %77 = vector.broadcast %cst_45 : f32 to vector<8x128xf32>
    %c0_46 = arith.constant 0 : index
    %c0_47 = arith.constant 0 : index
    %78 = vector.load %arg12[%c0_46, %c0_47] : memref<8x128xf32, #tpu.memory_space<vmem>>, vector<8x128xf32>
    tpu.vector_store %arg12[%c0_46, %c0_47], %77 {strides = array<i32>} : memref<8x128xf32, #tpu.memory_space<vmem>>, vector<8x128xf32>,
    %c0_48 = arith.constant 0 : index
    %c0_49 = arith.constant 0 : index
    %79 = vector.load %arg12[%c0_48, %c0_49] : memref<8x128xf32, #tpu.memory_space<vmem>>, vector<8x24xf32>
    tpu.vector_store %arg12[%c0_48, %c0_49], %76 {strides = array<i32>} : memref<8x128xf32, #tpu.memory_space<vmem>>, vector<8x24xf32>,
    return
  }
  func.func @transform_0(%arg0: i32) -> (i32, i32) {
    %c0_i32 = arith.constant 0 : i32
    %c0_i32_0 = arith.constant 0 : i32
    return %arg0, %c0_i32 : i32, i32
  }
  func.func @transform_1(%arg0: i32) -> (i32, i32) {
    %c0_i32 = arith.constant 0 : i32
    %c0_i32_0 = arith.constant 0 : i32
    return %arg0, %c0_i32 : i32, i32
  }
  func.func @transform_2(%arg0: i32) -> (i32, i32) {
    %c0_i32 = arith.constant 0 : i32
    %c0_i32_0 = arith.constant 0 : i32
    return %arg0, %c0_i32 : i32, i32
  }
  func.func @transform_3(%arg0: i32) -> (i32, i32) {
    %c0_i32 = arith.constant 0 : i32
    %c0_i32_0 = arith.constant 0 : i32
    %c0_i32_1 = arith.constant 0 : i32
    return %c0_i32, %c0_i32_0 : i32, i32
  }
  func.func @transform_4(%arg0: i32) -> (i32, i32) {
    %c0_i32 = arith.constant 0 : i32
    %c0_i32_0 = arith.constant 0 : i32
    %c0_i32_1 = arith.constant 0 : i32
    return %c0_i32, %c0_i32_0 : i32, i32
  }
  func.func @transform_5(%arg0: i32) -> (i32, i32) {
    %c0_i32 = arith.constant 0 : i32
    %c0_i32_0 = arith.constant 0 : i32
    %c0_i32_1 = arith.constant 0 : i32
    return %c0_i32, %c0_i32_0 : i32, i32
  }
  func.func @transform_6(%arg0: i32) -> (i32, i32) {
    %c0_i32 = arith.constant 0 : i32
    %c0_i32_0 = arith.constant 0 : i32
    %c0_i32_1 = arith.constant 0 : i32
    return %c0_i32, %c0_i32_0 : i32, i32
  }
  func.func @transform_7(%arg0: i32) -> (i32, i32) {
    %c0_i32 = arith.constant 0 : i32
    %c0_i32_0 = arith.constant 0 : i32
    %c0_i32_1 = arith.constant 0 : i32
    return %c0_i32, %c0_i32_0 : i32, i32
  }
  func.func @transform_8(%arg0: i32) -> (i32, i32) {
    %c0_i32 = arith.constant 0 : i32
    %c0_i32_0 = arith.constant 0 : i32
    %c0_i32_1 = arith.constant 0 : i32
    return %c0_i32, %c0_i32_0 : i32, i32
  }
  func.func @transform_9(%arg0: i32) -> (i32, i32) {
    %c0_i32 = arith.constant 0 : i32
    %c0_i32_0 = arith.constant 0 : i32
    %c0_i32_1 = arith.constant 0 : i32
    return %c0_i32, %c0_i32_0 : i32, i32
  }
  func.func @transform_10(%arg0: i32) -> (i32, i32) {
    %c0_i32 = arith.constant 0 : i32
    %c0_i32_0 = arith.constant 0 : i32
    %c0_i32_1 = arith.constant 0 : i32
    return %c0_i32, %c0_i32_0 : i32, i32
  }
  func.func @transform_11(%arg0: i32) -> (i32, i32) {
    %c0_i32 = arith.constant 0 : i32
    %c0_i32_0 = arith.constant 0 : i32
    return %arg0, %c0_i32 : i32, i32
  }
}

</mosaic_0001>

<bundles_post_ra>
// kernel: tsvae_decoder.1
= control target key start
LH: loop header
LB: loop body
LE: loop exit
PB: predicated region body
PF: predicated region fallthrough
CT: control target
= control target key end

     0   :  { %v3354_v1 = vmov 0.0   ;;  %vm3355_vm0 = vmmov 0   ;;  %vm58_vm1 = vcmask 130048   ;;  %v3356_v20 = vmov 0   ;;  %s4389_s0 = inlined_call_operand.vmem [shape: f32[8,16], index: 0, kind: input, shape index: {}]   ;;  %s4390_s1 = inlined_call_operand.vmem [shape: f32[8,24], index: 1, kind: input, shape index: {}]   ;;  %s4391_s2 = inlined_call_operand.vmem [shape: f32[8,24], index: 2, kind: input, shape index: {}]   ;;  %s4392_s3 = inlined_call_operand.vmem [shape: f32[1,1816], index: 3, kind: input, shape index: {}]   ;;  %s4393_s4 = inlined_call_operand.vmem [shape: bf16[16,128], index: 4, kind: input, shape index: {}]   ;;  %s4394_s5 = inlined_call_operand.vmem [shape: bf16[128,256], index: 5, kind: input, shape index: {}]   ;;  %s4395_s6 = inlined_call_operand.vmem [shape: bf16[256,512], index: 6, kind: input, shape index: {}]   ;;  %s4396_s7 = inlined_call_operand.vmem [shape: bf16[512,512], index: 7, kind: input, shape index: {}]   ;;  %s4397_s8 = inlined_call_operand.vmem [shape: bf16[512,256], index: 8, kind: input, shape index: {}]   ;;  %s4398_s9 = inlined_call_operand.vmem [shape: bf16[256,128], index: 9, kind: input, shape index: {}]   ;;  %s4399_s10 = inlined_call_operand.vmem [shape: bf16[128,24], index: 10, kind: input, shape index: {}]   ;;  %s4400_s11 = inlined_call_operand.hbm [shape: f32[8,128], index: 11, kind: output, shape index: {}]  }
   0x1   :  { %v2898_v0 = vld [vmem:[%s4393_s4] sm:$0xff]   ;;  %2868 = vmatprep.subr.bf16.mxu0 %v3354_v1  ;;  %2517 = vst [vmem:[#allocation2] sm:$0xff] %v3354_v1  ;;  %2870 = vmatprep.mubr.msk.bf16.mxu0 %vm3355_vm0, %v3354_v1  ;;  %v2899_v4 = vld [vmem:[%s4394_s5 + $0x74] ss:$8 sps:$4 sm:$0xff]   ;;  %v2901_v5 = vld [vmem:[%s4394_s5 + $0x70] ss:$8 sps:$4 sm:$0xff]  }
   0x2   :  { %v41_v2 = vld [vmem:[%s4389_s0] sm:$0xff]  ;;  %2869 = vmatpush3.bf16.msra.mxu0 %v2898_v0  ;;  %214 = vmatprep.subr.bf16.mxu1 %v2899_v4  ;;  %v2905_v8 = vld [vmem:[%s4394_s5 + $0x54] ss:$8 sps:$4 sm:$0xff]   ;;  %v2907_v9 = vld [vmem:[%s4394_s5 + $0x50] ss:$8 sps:$4 sm:$0xff]  }
   0x3   :  { %v42_v3 = vpack.c.bf16 %v41_v2, %v41_v2  ;;  %v2902_v6 = vld [vmem:[%s4394_s5 + $0x64] ss:$8 sps:$4 sm:$0xff]   ;;  %215 = vmatpush1.bf16.msra.mxu1 %v2901_v5  ;;  %v2904_v7 = vld [vmem:[%s4394_s5 + $0x60] ss:$8 sps:$4 sm:$0xff]   ;;  %v2911_v12 = vld [vmem:[%s4394_s5 + $0x34] ss:$8 sps:$4 sm:$0xff]   ;;  %246 = vmatprep.mubr.bf16.mxu1 %v3356_v20 }
   0x4   :  { %216 = vmatprep.subr.bf16.mxu1 %v2902_v6  ;;  %v2908_v10 = vld [vmem:[%s4394_s5 + $0x44] ss:$8 sps:$4 sm:$0xff]   ;;  %v2910_v11 = vld [vmem:[%s4394_s5 + $0x40] ss:$8 sps:$4 sm:$0xff]   ;;  %v2913_v13 = vld [vmem:[%s4394_s5 + $0x30] ss:$8 sps:$4 sm:$0xff]  }
   0x5   :  { %2871 = vmatmul.mubr.msk.bf16.vlgmr.msra.gmra.mxu0 %vm58_vm1, %v42_v3  ;;  %v2914_v14 = vld [vmem:[%s4394_s5 + $0x24] ss:$8 sps:$4 sm:$0xff]   ;;  %v2916_v15 = vld [vmem:[%s4394_s5 + $0x20] ss:$8 sps:$4 sm:$0xff]   ;;  %v2917_v16 = vld [vmem:[%s4394_s5 + $0x14] ss:$8 sps:$4 sm:$0xff]  }
   0x6   :  { %v2919_v17 = vld [vmem:[%s4394_s5 + $0x10] ss:$8 sps:$4 sm:$0xff]   ;;  %v2920_v18 = vld [vmem:[%s4394_s5 + $0x4] ss:$8 sps:$4 sm:$0xff]   ;;  %v2922_v19 = vld [vmem:[%s4394_s5] ss:$8 sps:$4 sm:$0xff]  }
   0x7   :  { %217 = vmatpush1.bf16.msra.mxu1 %v2904_v7  ;;  %v2923_v21 = vld [vmem:[%s4395_s6 + $0xe0] ss:$16 sps:$4 sm:$0xff]   ;;  %v2925_v22 = vld [vmem:[%s4395_s6 + $0xe4] ss:$16 sps:$4 sm:$0xff]   ;;  %v2928_v23 = vld [vmem:[%s4395_s6 + $0xec] ss:$16 sps:$4 sm:$0xff]  }
   0x8   :  { %218 = vmatprep.subr.bf16.mxu1 %v2905_v8  ;;  %v2931_v24 = vld [vmem:[%s4395_s6 + $0xc4] ss:$16 sps:$4 sm:$0xff]   ;;  %669 = vmatprep.subr.bf16.mxu0 %v2925_v22  ;;  %v2929_v25 = vld [vmem:[%s4395_s6 + $0xc0] ss:$16 sps:$4 sm:$0xff]  }
   0x9   :  { %670 = vmatpush1.bf16.msra.mxu0 %v2923_v21  ;;  %v2937_v26 = vld [vmem:[%s4395_s6 + $0xa4] ss:$16 sps:$4 sm:$0xff]   ;;  %v2935_v27 = vld [vmem:[%s4395_s6 + $0xa0] ss:$16 sps:$4 sm:$0xff]  }
   0xa   :  { %671 = vmatprep.subr.bf16.mxu0 %v2931_v24  ;;  %v2943_v28 = vld [vmem:[%s4395_s6 + $0x84] ss:$16 sps:$4 sm:$0xff]   ;;  %v2941_v29 = vld [vmem:[%s4395_s6 + $0x80] ss:$16 sps:$4 sm:$0xff]  }
   0xb   :  { %219 = vmatpush1.bf16.msra.mxu1 %v2907_v9  ;;  %v2949_v30 = vld [vmem:[%s4395_s6 + $0x64] ss:$16 sps:$4 sm:$0xff]   ;;  %v2947_v31 = vld [vmem:[%s4395_s6 + $0x60] ss:$16 sps:$4 sm:$0xff]  }
   0xc   :  { %220 = vmatprep.subr.bf16.mxu1 %v2908_v10  ;;  %v2955_v32 = vld [vmem:[%s4395_s6 + $0x44] ss:$16 sps:$4 sm:$0xff]   ;;  %v2953_v33 = vld [vmem:[%s4395_s6 + $0x40] ss:$16 sps:$4 sm:$0xff]  }
   0xd   :  { %672 = vmatpush1.bf16.msra.mxu0 %v2929_v25  ;;  %v2961_v34 = vld [vmem:[%s4395_s6 + $0x24] ss:$16 sps:$4 sm:$0xff]   ;;  %v2959_v35 = vld [vmem:[%s4395_s6 + $0x20] ss:$16 sps:$4 sm:$0xff]  }
   0xe   :  { %673 = vmatprep.subr.bf16.mxu0 %v2937_v26  ;;  %v2967_v36 = vld [vmem:[%s4395_s6 + $0x4] ss:$16 sps:$4 sm:$0xff]   ;;  %v2965_v37 = vld [vmem:[%s4395_s6] ss:$16 sps:$4 sm:$0xff]  }
   0xf   :  { %221 = vmatpush1.bf16.msra.mxu1 %v2910_v11  ;;  %v2973_v38 = vld [vmem:[%s4395_s6 + $0x1e4] ss:$16 sps:$4 sm:$0xff]   ;;  %v2971_v39 = vld [vmem:[%s4395_s6 + $0x1e0] ss:$16 sps:$4 sm:$0xff]  }
  0x10   :  { %222 = vmatprep.subr.bf16.mxu1 %v2911_v12  ;;  %v2979_v40 = vld [vmem:[%s4395_s6 + $0x1c4] ss:$16 sps:$4 sm:$0xff]   ;;  %v2977_v41 = vld [vmem:[%s4395_s6 + $0x1c0] ss:$16 sps:$4 sm:$0xff]  }
  0x11   :  { %674 = vmatpush1.bf16.msra.mxu0 %v2935_v27  ;;  %v2985_v42 = vld [vmem:[%s4395_s6 + $0x1a4] ss:$16 sps:$4 sm:$0xff]   ;;  %v2983_v43 = vld [vmem:[%s4395_s6 + $0x1a0] ss:$16 sps:$4 sm:$0xff]  }
  0x12   :  { %675 = vmatprep.subr.bf16.mxu0 %v2943_v28  ;;  %v2991_v44 = vld [vmem:[%s4395_s6 + $0x184] ss:$16 sps:$4 sm:$0xff]   ;;  %v2989_v45 = vld [vmem:[%s4395_s6 + $0x180] ss:$16 sps:$4 sm:$0xff]  }
  0x13   :  { %223 = vmatpush1.bf16.msra.mxu1 %v2913_v13  ;;  %v2997_v46 = vld [vmem:[%s4395_s6 + $0x164] ss:$16 sps:$4 sm:$0xff]   ;;  %v2995_v47 = vld [vmem:[%s4395_s6 + $0x160] ss:$16 sps:$4 sm:$0xff]  }
  0x14   :  { %224 = vmatprep.subr.bf16.mxu1 %v2914_v14  ;;  %v3003_v48 = vld [vmem:[%s4395_s6 + $0x144] ss:$16 sps:$4 sm:$0xff]   ;;  %v3001_v49 = vld [vmem:[%s4395_s6 + $0x140] ss:$16 sps:$4 sm:$0xff]  }
  0x15   :  { %676 = vmatpush1.bf16.msra.mxu0 %v2941_v29 }
  0x16   :  { %677 = vmatprep.subr.bf16.mxu0 %v2949_v30 }
  0x17   :  { %225 = vmatpush1.bf16.msra.mxu1 %v2916_v15 }
  0x18   :  { %226 = vmatprep.subr.bf16.mxu1 %v2917_v16 }
  0x19   :  { %678 = vmatpush1.bf16.msra.mxu0 %v2947_v31 }
  0x1a   :  { %679 = vmatprep.subr.bf16.mxu0 %v2955_v32 }
  0x1b   :  { %227 = vmatpush1.bf16.msra.mxu1 %v2919_v17 }
  0x1c   :  { %228 = vmatprep.subr.bf16.mxu1 %v2920_v18 }
  0x1d   :  { %680 = vmatpush1.bf16.msra.mxu0 %v2953_v33 }
  0x1e   :  { %681 = vmatprep.subr.bf16.mxu0 %v2961_v34 }
  0x1f   :  { %229 = vmatpush1.bf16.msra.mxu1 %v2922_v19 }
  0x20   :  { %710 = vmatprep.subr.bf16.mxu1 %v2928_v23 }
  0x21   :  { %682 = vmatpush1.bf16.msra.mxu0 %v2959_v35 }
  0x22   :  { %683 = vmatprep.subr.bf16.mxu0 %v2967_v36 }
  0x25   :  { %684 = vmatpush1.bf16.msra.mxu0 %v2965_v37 }
  0x26   :  { %685 = vmatprep.subr.bf16.mxu0 %v2973_v38 }
  0x29   :  { %686 = vmatpush2.bf16.msra.mxu0 %v2971_v39 }
  0x2a   :  { %687 = vmatprep.subr.bf16.mxu0 %v2979_v40 }
  0x2d   :  { %688 = vmatpush2.bf16.msra.mxu0 %v2977_v41 }
  0x2e   :  { %689 = vmatprep.subr.bf16.mxu0 %v2985_v42 }
  0x31   :  { %690 = vmatpush2.bf16.msra.mxu0 %v2983_v43 }
  0x32   :  { %691 = vmatprep.subr.bf16.mxu0 %v2991_v44 }
  0x35   :  { %692 = vmatpush2.bf16.msra.mxu0 %v2989_v45 }
  0x36   :  { %693 = vmatprep.subr.bf16.mxu0 %v2997_v46 }
  0x39   :  { %694 = vmatpush2.bf16.msra.mxu0 %v2995_v47 }
  0x3a   :  { %695 = vmatprep.subr.bf16.mxu0 %v3003_v48 }
  0x3d   :  { %696 = vmatpush2.bf16.msra.mxu0 %v3001_v49 }
  0x3e   :  { %16 = vsyncpa [#allocation3], 0  ;;  %v2534_v50 = vld [vmem:[%s4392_s3] ss:$0 sm:$0xff]  ;;  %v2926_v57 = vld [vmem:[%s4395_s6 + $0xe8] ss:$16 sps:$4 sm:$0xff]   ;;  %v124_v32 = vlaneseq }
  0x3f   :  { %v2934_v59 = vld [vmem:[%s4395_s6 + $0xcc] ss:$16 sps:$4 sm:$0xff]   ;;  %v2932_v61 = vld [vmem:[%s4395_s6 + $0xc8] ss:$16 sps:$4 sm:$0xff]   ;;  %v3009_v22 = vld [vmem:[%s4395_s6 + $0x124] ss:$16 sps:$4 sm:$0xff]  }
  0x40   :  { %v2940_v62 = vld [vmem:[%s4395_s6 + $0xac] ss:$16 sps:$4 sm:$0xff]   ;;  %v2938_v63 = vld [vmem:[%s4395_s6 + $0xa8] ss:$16 sps:$4 sm:$0xff]   ;;  %v3007_v24 = vld [vmem:[%s4395_s6 + $0x120] ss:$16 sps:$4 sm:$0xff]   ;;  %697 = vmatprep.subr.bf16.mxu0 %v3009_v22 }
  0x41   :  { %v2946_v0 = vld [vmem:[%s4395_s6 + $0x8c] ss:$16 sps:$4 sm:$0xff]   ;;  %v2944_v1 = vld [vmem:[%s4395_s6 + $0x88] ss:$16 sps:$4 sm:$0xff]   ;;  %698 = vmatpush2.bf16.msra.mxu0 %v3007_v24  ;;  %v3015_v26 = vld [vmem:[%s4395_s6 + $0x104] ss:$16 sps:$4 sm:$0xff]  }
  0x42   :  { %v2952_v2 = vld [vmem:[%s4395_s6 + $0x6c] ss:$16 sps:$4 sm:$0xff]   ;;  %v2950_v3 = vld [vmem:[%s4395_s6 + $0x68] ss:$16 sps:$4 sm:$0xff]   ;;  %v3013_v28 = vld [vmem:[%s4395_s6 + $0x100] ss:$16 sps:$4 sm:$0xff]   ;;  %699 = vmatprep.subr.bf16.mxu0 %v3015_v26 }
  0x43   :  { %v2958_v4 = vld [vmem:[%s4395_s6 + $0x4c] ss:$16 sps:$4 sm:$0xff]   ;;  %v2956_v5 = vld [vmem:[%s4395_s6 + $0x48] ss:$16 sps:$4 sm:$0xff]   ;;  %v3021_v30 = vld [vmem:[%s4396_s7 + $0xe4] ss:$16 sps:$4 sm:$0xff]  }
  0x44   :  { %v2964_v6 = vld [vmem:[%s4395_s6 + $0x2c] ss:$16 sps:$4 sm:$0xff]   ;;  %v2962_v7 = vld [vmem:[%s4395_s6 + $0x28] ss:$16 sps:$4 sm:$0xff]   ;;  %v3024_v31 = vld [vmem:[%s4396_s7 + $0x2e4] ss:$16 sps:$4 sm:$0xff]  }
  0x45   :  { %v2970_v8 = vld [vmem:[%s4395_s6 + $0xc] ss:$16 sps:$4 sm:$0xff]   ;;  %v2968_v9 = vld [vmem:[%s4395_s6 + $0x8] ss:$16 sps:$4 sm:$0xff]   ;;  %700 = vmatpush2.bf16.msra.mxu0 %v3013_v28  ;;  %v3674_v33 = vshrl.u32 %v124_v32, 7  ;;  %s3357_s26 = smov [#allocation2]  }
  0x46   :  { %v2976_v10 = vld [vmem:[%s4395_s6 + $0x1ec] ss:$16 sps:$4 sm:$0xff]   ;;  %v2974_v11 = vld [vmem:[%s4395_s6 + $0x1e8] ss:$16 sps:$4 sm:$0xff]   ;;  %1557 = vmatprep.subr.bf16.mxu0 %v3021_v30  ;;  %v106_v35 = vld [vmem:[%s4392_s3 + $0x1] sm:$0x3] }
  0x47   :  { %v2982_v12 = vld [vmem:[%s4395_s6 + $0x1cc] ss:$16 sps:$4 sm:$0xff]   ;;  %v2980_v13 = vld [vmem:[%s4395_s6 + $0x1c8] ss:$16 sps:$4 sm:$0xff]   ;;  %v3677_v34 = vsub.s32 0, %v3674_v33  ;;  %v3683_v36 = vsub.s32 1, %v3674_v33 }
  0x48   :  { %v2988_v14 = vld [vmem:[%s4395_s6 + $0x1ac] ss:$16 sps:$4 sm:$0xff]   ;;  %v2986_v15 = vld [vmem:[%s4395_s6 + $0x1a8] ss:$16 sps:$4 sm:$0xff]   ;;  %v3019_v49 = vld [vmem:[%s4396_s7 + $0xe0] ss:$16 sps:$4 sm:$0xff]  }
  0x49   :  { %v2994_v16 = vld [vmem:[%s4395_s6 + $0x18c] ss:$16 sps:$4 sm:$0xff]   ;;  %v2992_v17 = vld [vmem:[%s4395_s6 + $0x188] ss:$16 sps:$4 sm:$0xff]   ;;  %v127_v37 = vrot.slane %v106_v35, %v3677_v34  ;;  %v131_v38 = vrot.slane %v106_v35, %v3683_v36  ;;  %v3078_v22 = vld [vmem:[%s4396_s7 + $0x3c4] ss:$16 sps:$4 sm:$0xff]  }
  0x4a   :  { %v3000_v18 = vld [vmem:[%s4395_s6 + $0x16c] ss:$16 sps:$4 sm:$0xff]   ;;  %v2998_v19 = vld [vmem:[%s4395_s6 + $0x168] ss:$16 sps:$4 sm:$0xff]   ;;  %v3076_v24 = vld [vmem:[%s4396_s7 + $0x3c0] ss:$16 sps:$4 sm:$0xff]  }
  0x4b   :  { %v3006_v20 = vld [vmem:[%s4395_s6 + $0x14c] ss:$16 sps:$4 sm:$0xff]   ;;  %v3004_v21 = vld [vmem:[%s4395_s6 + $0x148] ss:$16 sps:$4 sm:$0xff]   ;;  %v3084_v26 = vld [vmem:[%s4396_s7 + $0x3a4] ss:$16 sps:$4 sm:$0xff]  }
  0x4c   :  { %v3012_v23 = vld [vmem:[%s4395_s6 + $0x12c] ss:$16 sps:$4 sm:$0xff]   ;;  %v3010_v25 = vld [vmem:[%s4395_s6 + $0x128] ss:$16 sps:$4 sm:$0xff]   ;;  %v3082_v28 = vld [vmem:[%s4396_s7 + $0x3a0] ss:$16 sps:$4 sm:$0xff]  }
  0x4d   :  { %v3018_v27 = vld [vmem:[%s4395_s6 + $0x10c] ss:$16 sps:$4 sm:$0xff]   ;;  %v3016_v29 = vld [vmem:[%s4395_s6 + $0x108] ss:$16 sps:$4 sm:$0xff]   ;;  %v3090_v30 = vld [vmem:[%s4396_s7 + $0x384] ss:$16 sps:$4 sm:$0xff]  }
  0x4e   :  { %v3088_v32 = vld [vmem:[%s4396_s7 + $0x380] ss:$16 sps:$4 sm:$0xff]   ;;  %v3093_v35 = vld [vmem:[%s4396_s7 + $0x164] ss:$16 sps:$4 sm:$0xff]   ;;  %s2526_s27 = sshll.u32 %s3357_s26, 4  ;;  %s2527_s27 = int_to_ptr.vmem [resolvable:$true] %s2526_s27 }
  0x4f   :  { %p3337_p1 = scmp.lt.s32.totalorder %s2527_s27, %s2527_s27 }
  0xc5   :  { %v96_v51 = vpop.f32.mrf.mxu0 }
  0xc6   :  { %v97_v52 = vadd.f32 %v2534_v50, %v96_v51  ;;  %v3022_v50 = vld [vmem:[%s4396_s7 + $0x2e0] ss:$16 sps:$4 sm:$0xff]  }
  0xc7   :  { %v2872_v53 = vpop.f32.mrf.mxu0 }
  0xc8   :  { %v102_v54 = vpack.c.bf16 %v97_v52, %v97_v52  ;;  %v3027_v52 = vld [vmem:[%s4396_s7 + $0xc4] ss:$16 sps:$4 sm:$0xff]  }
  0xc9   :  { %v99_v55 = vpop.f32.mrf.mxu0  ;;  %v3030_v53 = vld [vmem:[%s4396_s7 + $0x2c4] ss:$16 sps:$4 sm:$0xff]  }
  0xca   :  { %v104_v56 = vmul.bf16 1045249613, %v102_v54  ;;  %vm103_vm2 = vcmp.gt.bf16.partialorder %v102_v54, 0  ;;  %v3025_v55 = vld [vmem:[%s4396_s7 + $0xc0] ss:$16 sps:$4 sm:$0xff]  }
  0xcb   :  { %v2873_v58 = vpop.f32.mrf.mxu0 }
  0xcc   :  { %v105_v60 = vsel %vm103_vm2, %v102_v54, %v104_v56  ;;  %v3028_v56 = vld [vmem:[%s4396_s7 + $0x2c0] ss:$16 sps:$4 sm:$0xff]   ;;  %v3036_v58 = vld [vmem:[%s4396_s7 + $0x2a4] ss:$16 sps:$4 sm:$0xff]  }
  0xcd   :  { %247 = vmatmul.mubr.bf16.vlgmr.msra.gmra.mxu1 %v105_v60  ;;  %v3034_v60 = vld [vmem:[%s4396_s7 + $0x2a0] ss:$16 sps:$4 sm:$0xff]  }
  0xce   :  { %711 = vmatpush1.bf16.msra.mxu1 %v2926_v57  ;;  %v3033_v57 = vld [vmem:[%s4396_s7 + $0xa4] ss:$16 sps:$4 sm:$0xff]  }
  0xcf   :  { %712 = vmatprep.subr.bf16.mxu1 %v2934_v59  ;;  %v3031_v59 = vld [vmem:[%s4396_s7 + $0xa0] ss:$16 sps:$4 sm:$0xff]  }
  0xd2   :  { %713 = vmatpush1.bf16.msra.mxu1 %v2932_v61  ;;  %v3039_v61 = vld [vmem:[%s4396_s7 + $0x84] ss:$16 sps:$4 sm:$0xff]  }
  0xd3   :  { %714 = vmatprep.subr.bf16.mxu1 %v2940_v62  ;;  %v3042_v62 = vld [vmem:[%s4396_s7 + $0x284] ss:$16 sps:$4 sm:$0xff]  }
  0xd6   :  { %715 = vmatpush1.bf16.msra.mxu1 %v2938_v63  ;;  %v3037_v63 = vld [vmem:[%s4396_s7 + $0x80] ss:$16 sps:$4 sm:$0xff]  }
  0xd7   :  { %716 = vmatprep.subr.bf16.mxu1 %v2946_v0  ;;  %v3040_v0 = vld [vmem:[%s4396_s7 + $0x280] ss:$16 sps:$4 sm:$0xff]  }
  0xda   :  { %717 = vmatpush1.bf16.msra.mxu1 %v2944_v1  ;;  %v3045_v1 = vld [vmem:[%s4396_s7 + $0x64] ss:$16 sps:$4 sm:$0xff]  }
  0xdb   :  { %718 = vmatprep.subr.bf16.mxu1 %v2952_v2  ;;  %v3048_v2 = vld [vmem:[%s4396_s7 + $0x264] ss:$16 sps:$4 sm:$0xff]  }
  0xde   :  { %719 = vmatpush1.bf16.msra.mxu1 %v2950_v3  ;;  %v3043_v3 = vld [vmem:[%s4396_s7 + $0x60] ss:$16 sps:$4 sm:$0xff]  }
  0xdf   :  { %720 = vmatprep.subr.bf16.mxu1 %v2958_v4  ;;  %v3046_v4 = vld [vmem:[%s4396_s7 + $0x260] ss:$16 sps:$4 sm:$0xff]  }
  0xe2   :  { %721 = vmatpush1.bf16.msra.mxu1 %v2956_v5  ;;  %v3051_v5 = vld [vmem:[%s4396_s7 + $0x44] ss:$16 sps:$4 sm:$0xff]  }
  0xe3   :  { %722 = vmatprep.subr.bf16.mxu1 %v2964_v6  ;;  %v3054_v6 = vld [vmem:[%s4396_s7 + $0x244] ss:$16 sps:$4 sm:$0xff]  }
  0xe6   :  { %723 = vmatpush1.bf16.msra.mxu1 %v2962_v7  ;;  %v3049_v7 = vld [vmem:[%s4396_s7 + $0x40] ss:$16 sps:$4 sm:$0xff]  }
  0xe7   :  { %724 = vmatprep.subr.bf16.mxu1 %v2970_v8  ;;  %v3052_v8 = vld [vmem:[%s4396_s7 + $0x240] ss:$16 sps:$4 sm:$0xff]  }
  0xea   :  { %725 = vmatpush1.bf16.msra.mxu1 %v2968_v9  ;;  %v3057_v9 = vld [vmem:[%s4396_s7 + $0x24] ss:$16 sps:$4 sm:$0xff]  }
  0xeb   :  { %726 = vmatprep.subr.bf16.mxu1 %v2976_v10  ;;  %v3060_v10 = vld [vmem:[%s4396_s7 + $0x224] ss:$16 sps:$4 sm:$0xff]  }
  0xee   :  { %727 = vmatpush2.bf16.msra.mxu1 %v2974_v11  ;;  %v3055_v11 = vld [vmem:[%s4396_s7 + $0x20] ss:$16 sps:$4 sm:$0xff]  }
  0xef   :  { %728 = vmatprep.subr.bf16.mxu1 %v2982_v12  ;;  %v3058_v12 = vld [vmem:[%s4396_s7 + $0x220] ss:$16 sps:$4 sm:$0xff]  }
  0xf2   :  { %729 = vmatpush2.bf16.msra.mxu1 %v2980_v13  ;;  %v3063_v13 = vld [vmem:[%s4396_s7 + $0x4] ss:$16 sps:$4 sm:$0xff]  }
  0xf3   :  { %730 = vmatprep.subr.bf16.mxu1 %v2988_v14  ;;  %v3066_v14 = vld [vmem:[%s4396_s7 + $0x204] ss:$16 sps:$4 sm:$0xff]  }
  0xf6   :  { %731 = vmatpush2.bf16.msra.mxu1 %v2986_v15  ;;  %v3061_v15 = vld [vmem:[%s4396_s7] ss:$16 sps:$4 sm:$0xff]  }
  0xf7   :  { %732 = vmatprep.subr.bf16.mxu1 %v2994_v16  ;;  %v3064_v16 = vld [vmem:[%s4396_s7 + $0x200] ss:$16 sps:$4 sm:$0xff]  }
  0xfa   :  { %733 = vmatpush2.bf16.msra.mxu1 %v2992_v17  ;;  %v3069_v17 = vld [vmem:[%s4396_s7 + $0x1e4] ss:$16 sps:$4 sm:$0xff]  }
  0xfb   :  { %734 = vmatprep.subr.bf16.mxu1 %v3000_v18  ;;  %v3072_v18 = vld [vmem:[%s4396_s7 + $0x3e4] ss:$16 sps:$4 sm:$0xff]  }
  0xfe   :  { %735 = vmatpush2.bf16.msra.mxu1 %v2998_v19  ;;  %v3067_v19 = vld [vmem:[%s4396_s7 + $0x1e0] ss:$16 sps:$4 sm:$0xff]  }
  0xff   :  { %736 = vmatprep.subr.bf16.mxu1 %v3006_v20  ;;  %v3070_v20 = vld [vmem:[%s4396_s7 + $0x3e0] ss:$16 sps:$4 sm:$0xff]  }
 0x102   :  { %737 = vmatpush2.bf16.msra.mxu1 %v3004_v21  ;;  %v3075_v21 = vld [vmem:[%s4396_s7 + $0x1c4] ss:$16 sps:$4 sm:$0xff]  }
 0x103   :  { %738 = vmatprep.subr.bf16.mxu1 %v3012_v23  ;;  %v3073_v23 = vld [vmem:[%s4396_s7 + $0x1c0] ss:$16 sps:$4 sm:$0xff]  }
 0x106   :  { %739 = vmatpush2.bf16.msra.mxu1 %v3010_v25  ;;  %v3081_v25 = vld [vmem:[%s4396_s7 + $0x1a4] ss:$16 sps:$4 sm:$0xff]  }
 0x107   :  { %740 = vmatprep.subr.bf16.mxu1 %v3018_v27  ;;  %v3079_v27 = vld [vmem:[%s4396_s7 + $0x1a0] ss:$16 sps:$4 sm:$0xff]  }
 0x10a   :  { %741 = vmatpush2.bf16.msra.mxu1 %v3016_v29  ;;  %v3087_v29 = vld [vmem:[%s4396_s7 + $0x184] ss:$16 sps:$4 sm:$0xff]  }
 0x10b   :  { %1598 = vmatprep.subr.bf16.mxu1 %v3024_v31  ;;  %v3085_v31 = vld [vmem:[%s4396_s7 + $0x180] ss:$16 sps:$4 sm:$0xff]  }
 0x18d   :  { %v248_v39 = vpop.f32.mrf.mxu1 }
 0x18e   :  { %v249_v40 = vadd.f32 %v248_v39, %v127_v37  ;;  %v3096_v37 = vld [vmem:[%s4396_s7 + $0x364] ss:$16 sps:$4 sm:$0xff]   ;;  %v3094_v39 = vld [vmem:[%s4396_s7 + $0x360] ss:$16 sps:$4 sm:$0xff]  }
 0x18f   :  { %v250_v41 = vpop.f32.mrf.mxu1 }
 0x190   :  { %v255_v42 = vpack.c.bf16 %v249_v40, %v249_v40  ;;  %v251_v43 = vadd.f32 %v250_v41, %v131_v38  ;;  %v3091_v38 = vld [vmem:[%s4396_s7 + $0x160] ss:$16 sps:$4 sm:$0xff]   ;;  %v3099_v40 = vld [vmem:[%s4396_s7 + $0x144] ss:$16 sps:$4 sm:$0xff]  }
 0x191   :  { %v252_v44 = vpop.f32.mrf.mxu1  ;;  %v3102_v41 = vld [vmem:[%s4396_s7 + $0x344] ss:$16 sps:$4 sm:$0xff]  }
 0x192   :  { %v256_v45 = vpack.c.bf16 %v251_v43, %v251_v43  ;;  %v259_v46 = vmul.bf16 1045249613, %v255_v42  ;;  %vm257_vm3 = vcmp.gt.bf16.partialorder %v255_v42, 0  ;;  %v3100_v43 = vld [vmem:[%s4396_s7 + $0x340] ss:$16 sps:$4 sm:$0xff]  }
 0x193   :  { %v253_v47 = vpop.f32.mrf.mxu1  ;;  %v3105_v44 = vld [vmem:[%s4396_s7 + $0x124] ss:$16 sps:$4 sm:$0xff]  }
 0x194   :  { %v260_v48 = vmul.bf16 1045249613, %v256_v45  ;;  %vm258_vm4 = vcmp.gt.bf16.partialorder %v256_v45, 0  ;;  %v261_v54 = vsel %vm257_vm3, %v255_v42, %v259_v46  ;;  %v3097_v42 = vld [vmem:[%s4396_s7 + $0x140] ss:$16 sps:$4 sm:$0xff]  }
 0x195   :  { %v3103_v46 = vld [vmem:[%s4396_s7 + $0x120] ss:$16 sps:$4 sm:$0xff]  }
 0x196   :  { %v262_v51 = vsel %vm258_vm4, %v256_v45, %v260_v48  ;;  %v3108_v45 = vld [vmem:[%s4396_s7 + $0x324] ss:$16 sps:$4 sm:$0xff]   ;;  %v3106_v47 = vld [vmem:[%s4396_s7 + $0x320] ss:$16 sps:$4 sm:$0xff]  }
 0x197   :  { %701 = vmatprep.mubr.bf16.mxu0 %v262_v51  ;;  %742 = vmatprep.mubr.bf16.mxu1 %v262_v51  ;;  %v3111_v48 = vld [vmem:[%s4396_s7 + $0x104] ss:$16 sps:$4 sm:$0xff]   ;;  %v3112_v51 = vld [vmem:[%s4396_s7 + $0x300] ss:$16 sps:$4 sm:$0xff]  }
 0x198   :  { %702 = vmatmul.mubr.bf16.vlgmr.msra.gmra.mxu0 %v261_v54  ;;  %743 = vmatmul.mubr.bf16.vlgmr.msra.gmra.mxu1 %v261_v54  ;;  %v339_v54 = vsub.s32 2, %v3674_v33 }
 0x199   :  { %1558 = vmatpush1.bf16.msra.mxu0 %v3019_v49  ;;  %1599 = vmatpush1.bf16.msra.mxu1 %v3022_v50  ;;  %v3114_v49 = vld [vmem:[%s4396_s7 + $0x304] ss:$16 sps:$4 sm:$0xff]   ;;  %v3109_v50 = vld [vmem:[%s4396_s7 + $0x100] ss:$16 sps:$4 sm:$0xff]  }
 0x19a   :  { %1559 = vmatprep.subr.bf16.mxu0 %v3027_v52  ;;  %1600 = vmatprep.subr.bf16.mxu1 %v3030_v53  ;;  %v3117_v52 = vld [vmem:[%s4396_s7 + $0xec] ss:$16 sps:$4 sm:$0xff]  }
 0x19b   :  { %v3120_v53 = vld [vmem:[%s4396_s7 + $0x2ec] ss:$16 sps:$4 sm:$0xff]  }
 0x19d   :  { %1560 = vmatpush1.bf16.msra.mxu0 %v3025_v55  ;;  %1601 = vmatpush1.bf16.msra.mxu1 %v3028_v56  ;;  %v263_v55 = vld [vmem:[%s4392_s3 + $0x3] sm:$0xf]  ;;  %v343_v56 = vsub.s32 3, %v3674_v33 }
 0x19e   :  { %1561 = vmatprep.subr.bf16.mxu0 %v3033_v57  ;;  %1602 = vmatprep.subr.bf16.mxu1 %v3036_v58  ;;  %v332_v57 = vrot.slane %v263_v55, %v3677_v34  ;;  %v340_v58 = vrot.slane %v263_v55, %v339_v54 }
 0x1a1   :  { %1562 = vmatpush1.bf16.msra.mxu0 %v3031_v59  ;;  %1603 = vmatpush1.bf16.msra.mxu1 %v3034_v60  ;;  %v336_v59 = vrot.slane %v263_v55, %v3683_v36  ;;  %v344_v60 = vrot.slane %v263_v55, %v343_v56  ;;  %v3165_v55 = vld [vmem:[%s4396_s7 + $0x1ec] ss:$16 sps:$4 sm:$0xff]  }
 0x1a2   :  { %1563 = vmatprep.subr.bf16.mxu0 %v3039_v61  ;;  %1604 = vmatprep.subr.bf16.mxu1 %v3042_v62 }
 0x1a5   :  { %1564 = vmatpush1.bf16.msra.mxu0 %v3037_v63  ;;  %1605 = vmatpush1.bf16.msra.mxu1 %v3040_v0 }
 0x1a6   :  { %1565 = vmatprep.subr.bf16.mxu0 %v3045_v1  ;;  %1606 = vmatprep.subr.bf16.mxu1 %v3048_v2 }
 0x1a9   :  { %1566 = vmatpush1.bf16.msra.mxu0 %v3043_v3  ;;  %1607 = vmatpush1.bf16.msra.mxu1 %v3046_v4 }
 0x1aa   :  { %1567 = vmatprep.subr.bf16.mxu0 %v3051_v5  ;;  %1608 = vmatprep.subr.bf16.mxu1 %v3054_v6 }
 0x1ad   :  { %1568 = vmatpush1.bf16.msra.mxu0 %v3049_v7  ;;  %1609 = vmatpush1.bf16.msra.mxu1 %v3052_v8 }
 0x1ae   :  { %1569 = vmatprep.subr.bf16.mxu0 %v3057_v9  ;;  %1610 = vmatprep.subr.bf16.mxu1 %v3060_v10 }
 0x1b1   :  { %1570 = vmatpush1.bf16.msra.mxu0 %v3055_v11  ;;  %1611 = vmatpush1.bf16.msra.mxu1 %v3058_v12 }
 0x1b2   :  { %1571 = vmatprep.subr.bf16.mxu0 %v3063_v13  ;;  %1612 = vmatprep.subr.bf16.mxu1 %v3066_v14 }
 0x1b5   :  { %1572 = vmatpush1.bf16.msra.mxu0 %v3061_v15  ;;  %1613 = vmatpush1.bf16.msra.mxu1 %v3064_v16 }
 0x1b6   :  { %1573 = vmatprep.subr.bf16.mxu0 %v3069_v17  ;;  %1614 = vmatprep.subr.bf16.mxu1 %v3072_v18  ;;  %v3115_v17 = vld [vmem:[%s4396_s7 + $0xe8] ss:$16 sps:$4 sm:$0xff]  }
 0x1b7   :  { %v3118_v18 = vld [vmem:[%s4396_s7 + $0x2e8] ss:$16 sps:$4 sm:$0xff]  }
 0x1b9   :  { %1574 = vmatpush2.bf16.msra.mxu0 %v3067_v19  ;;  %1615 = vmatpush2.bf16.msra.mxu1 %v3070_v20 }
 0x1ba   :  { %1575 = vmatprep.subr.bf16.mxu0 %v3075_v21  ;;  %1616 = vmatprep.subr.bf16.mxu1 %v3078_v22 }
 0x1bd   :  { %1576 = vmatpush2.bf16.msra.mxu0 %v3073_v23  ;;  %1617 = vmatpush2.bf16.msra.mxu1 %v3076_v24  ;;  %v3123_v23 = vld [vmem:[%s4396_s7 + $0xcc] ss:$16 sps:$4 sm:$0xff]  }
 0x1be   :  { %1577 = vmatprep.subr.bf16.mxu0 %v3081_v25  ;;  %1618 = vmatprep.subr.bf16.mxu1 %v3084_v26  ;;  %v3126_v24 = vld [vmem:[%s4396_s7 + $0x2cc] ss:$16 sps:$4 sm:$0xff]   ;;  %v3121_v25 = vld [vmem:[%s4396_s7 + $0xc8] ss:$16 sps:$4 sm:$0xff]  }
 0x1bf   :  { %v3124_v26 = vld [vmem:[%s4396_s7 + $0x2c8] ss:$16 sps:$4 sm:$0xff]  }
 0x1c1   :  { %1578 = vmatpush2.bf16.msra.mxu0 %v3079_v27  ;;  %1619 = vmatpush2.bf16.msra.mxu1 %v3082_v28  ;;  %v3129_v27 = vld [vmem:[%s4396_s7 + $0xac] ss:$16 sps:$4 sm:$0xff]  }
 0x1c2   :  { %1579 = vmatprep.subr.bf16.mxu0 %v3087_v29  ;;  %1620 = vmatprep.subr.bf16.mxu1 %v3090_v30  ;;  %v3132_v28 = vld [vmem:[%s4396_s7 + $0x2ac] ss:$16 sps:$4 sm:$0xff]   ;;  %v3127_v29 = vld [vmem:[%s4396_s7 + $0xa8] ss:$16 sps:$4 sm:$0xff]  }
 0x1c3   :  { %v3130_v30 = vld [vmem:[%s4396_s7 + $0x2a8] ss:$16 sps:$4 sm:$0xff]  }
 0x1c5   :  { %1580 = vmatpush2.bf16.msra.mxu0 %v3085_v31  ;;  %1621 = vmatpush2.bf16.msra.mxu1 %v3088_v32  ;;  %v3135_v31 = vld [vmem:[%s4396_s7 + $0x8c] ss:$16 sps:$4 sm:$0xff]  }
 0x1c6   :  { %1581 = vmatprep.subr.bf16.mxu0 %v3093_v35  ;;  %1622 = vmatprep.subr.bf16.mxu1 %v3096_v37  ;;  %v3138_v32 = vld [vmem:[%s4396_s7 + $0x28c] ss:$16 sps:$4 sm:$0xff]   ;;  %v3133_v35 = vld [vmem:[%s4396_s7 + $0x88] ss:$16 sps:$4 sm:$0xff]  }
 0x1c7   :  { %v3136_v37 = vld [vmem:[%s4396_s7 + $0x288] ss:$16 sps:$4 sm:$0xff]  }
 0x1c9   :  { %1582 = vmatpush2.bf16.msra.mxu0 %v3091_v38  ;;  %1623 = vmatpush2.bf16.msra.mxu1 %v3094_v39  ;;  %v3141_v38 = vld [vmem:[%s4396_s7 + $0x6c] ss:$16 sps:$4 sm:$0xff]  }
 0x1ca   :  { %1583 = vmatprep.subr.bf16.mxu0 %v3099_v40  ;;  %1624 = vmatprep.subr.bf16.mxu1 %v3102_v41  ;;  %v3144_v39 = vld [vmem:[%s4396_s7 + $0x26c] ss:$16 sps:$4 sm:$0xff]   ;;  %v3139_v40 = vld [vmem:[%s4396_s7 + $0x68] ss:$16 sps:$4 sm:$0xff]  }
 0x1cb   :  { %v3142_v41 = vld [vmem:[%s4396_s7 + $0x268] ss:$16 sps:$4 sm:$0xff]  }
 0x1cd   :  { %1584 = vmatpush2.bf16.msra.mxu0 %v3097_v42  ;;  %1625 = vmatpush2.bf16.msra.mxu1 %v3100_v43  ;;  %v3147_v42 = vld [vmem:[%s4396_s7 + $0x4c] ss:$16 sps:$4 sm:$0xff]  }
 0x1ce   :  { %1585 = vmatprep.subr.bf16.mxu0 %v3105_v44  ;;  %1626 = vmatprep.subr.bf16.mxu1 %v3108_v45  ;;  %v3150_v43 = vld [vmem:[%s4396_s7 + $0x24c] ss:$16 sps:$4 sm:$0xff]   ;;  %v3145_v44 = vld [vmem:[%s4396_s7 + $0x48] ss:$16 sps:$4 sm:$0xff]  }
 0x1cf   :  { %v3148_v45 = vld [vmem:[%s4396_s7 + $0x248] ss:$16 sps:$4 sm:$0xff]  }
 0x1d1   :  { %1586 = vmatpush2.bf16.msra.mxu0 %v3103_v46  ;;  %1627 = vmatpush2.bf16.msra.mxu1 %v3106_v47  ;;  %v3153_v46 = vld [vmem:[%s4396_s7 + $0x2c] ss:$16 sps:$4 sm:$0xff]  }
 0x1d2   :  { %1587 = vmatprep.subr.bf16.mxu0 %v3111_v48  ;;  %1628 = vmatprep.subr.bf16.mxu1 %v3114_v49  ;;  %v3156_v47 = vld [vmem:[%s4396_s7 + $0x22c] ss:$16 sps:$4 sm:$0xff]   ;;  %v3151_v48 = vld [vmem:[%s4396_s7 + $0x28] ss:$16 sps:$4 sm:$0xff]  }
 0x1d3   :  { %v3154_v49 = vld [vmem:[%s4396_s7 + $0x228] ss:$16 sps:$4 sm:$0xff]  }
 0x1d5   :  { %1588 = vmatpush2.bf16.msra.mxu0 %v3109_v50  ;;  %1629 = vmatpush2.bf16.msra.mxu1 %v3112_v51  ;;  %v3159_v50 = vld [vmem:[%s4396_s7 + $0xc] ss:$16 sps:$4 sm:$0xff]  }
 0x1d6   :  { %1639 = vmatprep.subr.bf16.mxu0 %v3117_v52  ;;  %1680 = vmatprep.subr.bf16.mxu1 %v3120_v53  ;;  %v3162_v51 = vld [vmem:[%s4396_s7 + $0x20c] ss:$16 sps:$4 sm:$0xff]   ;;  %v3157_v52 = vld [vmem:[%s4396_s7 + $0x8] ss:$16 sps:$4 sm:$0xff]  }
 0x1d7   :  { %v3160_v53 = vld [vmem:[%s4396_s7 + $0x208] ss:$16 sps:$4 sm:$0xff]  }
 0x258   :  { %v703_v61 = vpop.f32.mrf.mxu0  ;;  %v744_v62 = vpop.f32.mrf.mxu1 }
 0x259   :  { %v704_v63 = vadd.f32 %v703_v61, %v332_v57  ;;  %v745_v0 = vadd.f32 %v744_v62, %v340_v58  ;;  %v3168_v57 = vld [vmem:[%s4396_s7 + $0x3ec] ss:$16 sps:$4 sm:$0xff]   ;;  %v3163_v58 = vld [vmem:[%s4396_s7 + $0x1e8] ss:$16 sps:$4 sm:$0xff]  }
 0x25a   :  { %v705_v1 = vpop.f32.mrf.mxu0  ;;  %v746_v2 = vpop.f32.mrf.mxu1  ;;  %v3174_v61 = vld [vmem:[%s4396_s7 + $0x3cc] ss:$16 sps:$4 sm:$0xff]   ;;  %v3169_v62 = vld [vmem:[%s4396_s7 + $0x1c8] ss:$16 sps:$4 sm:$0xff]  }
 0x25b   :  { %v751_v3 = vpack.c.bf16 %v704_v63, %v704_v63  ;;  %v753_v4 = vpack.c.bf16 %v745_v0, %v745_v0  ;;  %v706_v5 = vadd.f32 %v705_v1, %v336_v59  ;;  %v747_v6 = vadd.f32 %v746_v2, %v344_v60  ;;  %v3166_v59 = vld [vmem:[%s4396_s7 + $0x3e8] ss:$16 sps:$4 sm:$0xff]   ;;  %v3171_v60 = vld [vmem:[%s4396_s7 + $0x1cc] ss:$16 sps:$4 sm:$0xff]  }
 0x25c   :  { %v707_v7 = vpop.f32.mrf.mxu0  ;;  %v748_v8 = vpop.f32.mrf.mxu1  ;;  %v3172_v63 = vld [vmem:[%s4396_s7 + $0x3c8] ss:$16 sps:$4 sm:$0xff]   ;;  %v3177_v0 = vld [vmem:[%s4396_s7 + $0x1ac] ss:$16 sps:$4 sm:$0xff]  }
 0x25d   :  { %v752_v9 = vpack.c.bf16 %v706_v5, %v706_v5  ;;  %v754_v10 = vpack.c.bf16 %v747_v6, %v747_v6  ;;  %vm755_vm5 = vcmp.gt.bf16.partialorder %v751_v3, 0  ;;  %v759_v13 = vmul.bf16 1045249613, %v751_v3  ;;  %v3180_v1 = vld [vmem:[%s4396_s7 + $0x3ac] ss:$16 sps:$4 sm:$0xff]  }
 0x25e   :  { %v708_v11 = vpop.f32.mrf.mxu0  ;;  %v749_v12 = vpop.f32.mrf.mxu1  ;;  %vm757_vm6 = vcmp.gt.bf16.partialorder %v753_v4, 0  ;;  %v761_v14 = vmul.bf16 1045249613, %v753_v4  ;;  %v3175_v2 = vld [vmem:[%s4396_s7 + $0x1a8] ss:$16 sps:$4 sm:$0xff]  }
 0x25f   :  { %v760_v15 = vmul.bf16 1045249613, %v752_v9  ;;  %v762_v16 = vmul.bf16 1045249613, %v754_v10  ;;  %vm756_vm7 = vcmp.gt.bf16.partialorder %v752_v9, 0  ;;  %vm758_vm8 = vcmp.gt.bf16.partialorder %v754_v10, 0 }
 0x260   :  { %v3896_v21 = vsel %vm755_vm5, %v751_v3, %v759_v13  ;;  %v3898_v22 = vsel %vm757_vm6, %v753_v4, %v761_v14  ;;  %v3178_v3 = vld [vmem:[%s4396_s7 + $0x3a8] ss:$16 sps:$4 sm:$0xff]   ;;  %v3183_v4 = vld [vmem:[%s4396_s7 + $0x18c] ss:$16 sps:$4 sm:$0xff]  }
 0x261   :  { %v764_v19 = vsel %vm756_vm7, %v752_v9, %v760_v15  ;;  %v766_v20 = vsel %vm758_vm8, %v754_v10, %v762_v16  ;;  %v3186_v5 = vld [vmem:[%s4396_s7 + $0x38c] ss:$16 sps:$4 sm:$0xff]   ;;  %v3181_v6 = vld [vmem:[%s4396_s7 + $0x188] ss:$16 sps:$4 sm:$0xff]  }
 0x262   :  { %1589 = vmatprep.mubr.bf16.mxu0 %v764_v19  ;;  %1630 = vmatprep.mubr.bf16.mxu1 %v766_v20  ;;  %v3184_v7 = vld [vmem:[%s4396_s7 + $0x388] ss:$16 sps:$4 sm:$0xff]   ;;  %v3189_v8 = vld [vmem:[%s4396_s7 + $0x16c] ss:$16 sps:$4 sm:$0xff]  }
 0x263   :  { %1590 = vmatmul.mubr.bf16.vlgmr.msra.gmra.mxu0 %v3896_v21  ;;  %1631 = vmatmul.mubr.bf16.vlgmr.msra.gmra.mxu1 %v3898_v22  ;;  %v3192_v9 = vld [vmem:[%s4396_s7 + $0x36c] ss:$16 sps:$4 sm:$0xff]   ;;  %v3187_v10 = vld [vmem:[%s4396_s7 + $0x168] ss:$16 sps:$4 sm:$0xff]  }
 0x264   :  { %1640 = vmatpush1.bf16.msra.mxu0 %v3115_v17  ;;  %1681 = vmatpush1.bf16.msra.mxu1 %v3118_v18  ;;  %v3190_v11 = vld [vmem:[%s4396_s7 + $0x368] ss:$16 sps:$4 sm:$0xff]   ;;  %v3195_v12 = vld [vmem:[%s4396_s7 + $0x14c] ss:$16 sps:$4 sm:$0xff]  }
 0x265   :  { %1671 = vmatprep.mubr.bf16.mxu0 %v764_v19  ;;  %1712 = vmatprep.mubr.bf16.mxu1 %v766_v20  ;;  %v3198_v13 = vld [vmem:[%s4396_s7 + $0x34c] ss:$16 sps:$4 sm:$0xff]   ;;  %v3193_v14 = vld [vmem:[%s4396_s7 + $0x148] ss:$16 sps:$4 sm:$0xff]  }
 0x266   :  { %1641 = vmatprep.subr.bf16.mxu0 %v3123_v23  ;;  %1682 = vmatprep.subr.bf16.mxu1 %v3126_v24  ;;  %v3196_v15 = vld [vmem:[%s4396_s7 + $0x348] ss:$16 sps:$4 sm:$0xff]   ;;  %v3201_v16 = vld [vmem:[%s4396_s7 + $0x12c] ss:$16 sps:$4 sm:$0xff]  }
 0x267   :  { %v3204_v17 = vld [vmem:[%s4396_s7 + $0x32c] ss:$16 sps:$4 sm:$0xff]   ;;  %v3199_v18 = vld [vmem:[%s4396_s7 + $0x128] ss:$16 sps:$4 sm:$0xff]  }
 0x268   :  { %1642 = vmatpush1.bf16.msra.mxu0 %v3121_v25  ;;  %1683 = vmatpush1.bf16.msra.mxu1 %v3124_v26  ;;  %v3202_v19 = vld [vmem:[%s4396_s7 + $0x328] ss:$16 sps:$4 sm:$0xff]   ;;  %v3207_v20 = vld [vmem:[%s4396_s7 + $0x10c] ss:$16 sps:$4 sm:$0xff]  }
 0x269   :  { %1643 = vmatprep.subr.bf16.mxu0 %v3129_v27  ;;  %1684 = vmatprep.subr.bf16.mxu1 %v3132_v28  ;;  %v3210_v23 = vld [vmem:[%s4396_s7 + $0x30c] ss:$16 sps:$4 sm:$0xff]   ;;  %v3205_v24 = vld [vmem:[%s4396_s7 + $0x108] ss:$16 sps:$4 sm:$0xff]  }
 0x26a   :  { %v3208_v25 = vld [vmem:[%s4396_s7 + $0x308] ss:$16 sps:$4 sm:$0xff]   ;;  %v3213_v26 = vld [vmem:[%s4397_s8 + $0x74] ss:$8 sps:$4 sm:$0xff]   ;;  %v3216_v28 = vld [vmem:[%s4397_s8 + $0x64] ss:$8 sps:$4 sm:$0xff]  }
 0x26b   :  { %v3211_v27 = vld [vmem:[%s4397_s8 + $0x70] ss:$8 sps:$4 sm:$0xff]  }
 0x26c   :  { %1644 = vmatpush1.bf16.msra.mxu0 %v3127_v29  ;;  %1685 = vmatpush1.bf16.msra.mxu1 %v3130_v30  ;;  %v3214_v29 = vld [vmem:[%s4397_s8 + $0x60] ss:$8 sps:$4 sm:$0xff]   ;;  %v3219_v30 = vld [vmem:[%s4397_s8 + $0x54] ss:$8 sps:$4 sm:$0xff]  }
 0x26d   :  { %1645 = vmatprep.subr.bf16.mxu0 %v3135_v31  ;;  %1686 = vmatprep.subr.bf16.mxu1 %v3138_v32  ;;  %v3217_v31 = vld [vmem:[%s4397_s8 + $0x50] ss:$8 sps:$4 sm:$0xff]   ;;  %v3225_v32 = vld [vmem:[%s4397_s8 + $0x34] ss:$8 sps:$4 sm:$0xff]  }
 0x270   :  { %1646 = vmatpush1.bf16.msra.mxu0 %v3133_v35  ;;  %1687 = vmatpush1.bf16.msra.mxu1 %v3136_v37  ;;  %v3261_v35 = vld [vmem:[%s4397_s8 + $0x174] ss:$8 sps:$4 sm:$0xff]   ;;  %v3259_v37 = vld [vmem:[%s4397_s8 + $0x170] ss:$8 sps:$4 sm:$0xff]  }
 0x271   :  { %1647 = vmatprep.subr.bf16.mxu0 %v3141_v38  ;;  %1688 = vmatprep.subr.bf16.mxu1 %v3144_v39  ;;  %v3223_v38 = vld [vmem:[%s4397_s8 + $0x30] ss:$8 sps:$4 sm:$0xff]   ;;  %v3264_v39 = vld [vmem:[%s4397_s8 + $0x164] ss:$8 sps:$4 sm:$0xff]  }
 0x274   :  { %1648 = vmatpush1.bf16.msra.mxu0 %v3139_v40  ;;  %1689 = vmatpush1.bf16.msra.mxu1 %v3142_v41  ;;  %v3228_v40 = vld [vmem:[%s4397_s8 + $0x24] ss:$8 sps:$4 sm:$0xff]   ;;  %v3262_v41 = vld [vmem:[%s4397_s8 + $0x160] ss:$8 sps:$4 sm:$0xff]  }
 0x275   :  { %1649 = vmatprep.subr.bf16.mxu0 %v3147_v42  ;;  %1690 = vmatprep.subr.bf16.mxu1 %v3150_v43  ;;  %v3267_v42 = vld [vmem:[%s4397_s8 + $0x154] ss:$8 sps:$4 sm:$0xff]   ;;  %v3226_v43 = vld [vmem:[%s4397_s8 + $0x20] ss:$8 sps:$4 sm:$0xff]  }
 0x278   :  { %1650 = vmatpush1.bf16.msra.mxu0 %v3145_v44  ;;  %1691 = vmatpush1.bf16.msra.mxu1 %v3148_v45  ;;  %v3231_v44 = vld [vmem:[%s4397_s8 + $0x14] ss:$8 sps:$4 sm:$0xff]   ;;  %v3265_v45 = vld [vmem:[%s4397_s8 + $0x150] ss:$8 sps:$4 sm:$0xff]  }
 0x279   :  { %1651 = vmatprep.subr.bf16.mxu0 %v3153_v46  ;;  %1692 = vmatprep.subr.bf16.mxu1 %v3156_v47  ;;  %v3270_v46 = vld [vmem:[%s4397_s8 + $0x144] ss:$8 sps:$4 sm:$0xff]   ;;  %v3229_v47 = vld [vmem:[%s4397_s8 + $0x10] ss:$8 sps:$4 sm:$0xff]  }
 0x27c   :  { %1652 = vmatpush1.bf16.msra.mxu0 %v3151_v48  ;;  %1693 = vmatpush1.bf16.msra.mxu1 %v3154_v49  ;;  %v3234_v48 = vld [vmem:[%s4397_s8 + $0x4] ss:$8 sps:$4 sm:$0xff]   ;;  %v3268_v49 = vld [vmem:[%s4397_s8 + $0x140] ss:$8 sps:$4 sm:$0xff]  }
 0x27d   :  { %1653 = vmatprep.subr.bf16.mxu0 %v3159_v50  ;;  %1694 = vmatprep.subr.bf16.mxu1 %v3162_v51  ;;  %v3273_v50 = vld [vmem:[%s4397_s8 + $0x134] ss:$8 sps:$4 sm:$0xff]   ;;  %v3232_v51 = vld [vmem:[%s4397_s8] ss:$8 sps:$4 sm:$0xff]  }
 0x280   :  { %1654 = vmatpush1.bf16.msra.mxu0 %v3157_v52  ;;  %1695 = vmatpush1.bf16.msra.mxu1 %v3160_v53  ;;  %v3237_v52 = vld [vmem:[%s4397_s8 + $0xf4] ss:$8 sps:$4 sm:$0xff]   ;;  %v3271_v53 = vld [vmem:[%s4397_s8 + $0x130] ss:$8 sps:$4 sm:$0xff]  }
 0x281   :  { %1655 = vmatprep.subr.bf16.mxu0 %v3165_v55  ;;  %1696 = vmatprep.subr.bf16.mxu1 %v3168_v57  ;;  %v3276_v55 = vld [vmem:[%s4397_s8 + $0x124] ss:$8 sps:$4 sm:$0xff]   ;;  %v3235_v57 = vld [vmem:[%s4397_s8 + $0xf0] ss:$8 sps:$4 sm:$0xff]  }
 0x284   :  { %1656 = vmatpush2.bf16.msra.mxu0 %v3163_v58  ;;  %1697 = vmatpush2.bf16.msra.mxu1 %v3166_v59  ;;  %v3240_v58 = vld [vmem:[%s4397_s8 + $0xe4] ss:$8 sps:$4 sm:$0xff]   ;;  %v3274_v59 = vld [vmem:[%s4397_s8 + $0x120] ss:$8 sps:$4 sm:$0xff]  }
 0x285   :  { %1657 = vmatprep.subr.bf16.mxu0 %v3171_v60  ;;  %1698 = vmatprep.subr.bf16.mxu1 %v3174_v61  ;;  %v3279_v60 = vld [vmem:[%s4397_s8 + $0x114] ss:$8 sps:$4 sm:$0xff]   ;;  %v3238_v61 = vld [vmem:[%s4397_s8 + $0xe0] ss:$8 sps:$4 sm:$0xff]  }
 0x288   :  { %1658 = vmatpush2.bf16.msra.mxu0 %v3169_v62  ;;  %1699 = vmatpush2.bf16.msra.mxu1 %v3172_v63  ;;  %v3243_v62 = vld [vmem:[%s4397_s8 + $0xd4] ss:$8 sps:$4 sm:$0xff]   ;;  %v3277_v63 = vld [vmem:[%s4397_s8 + $0x110] ss:$8 sps:$4 sm:$0xff]  }
 0x289   :  { %1659 = vmatprep.subr.bf16.mxu0 %v3177_v0  ;;  %1700 = vmatprep.subr.bf16.mxu1 %v3180_v1  ;;  %v3282_v0 = vld [vmem:[%s4397_s8 + $0x104] ss:$8 sps:$4 sm:$0xff]   ;;  %v3241_v1 = vld [vmem:[%s4397_s8 + $0xd0] ss:$8 sps:$4 sm:$0xff]  }
 0x28c   :  { %1660 = vmatpush2.bf16.msra.mxu0 %v3175_v2  ;;  %1701 = vmatpush2.bf16.msra.mxu1 %v3178_v3  ;;  %v3246_v2 = vld [vmem:[%s4397_s8 + $0xc4] ss:$8 sps:$4 sm:$0xff]   ;;  %v3280_v3 = vld [vmem:[%s4397_s8 + $0x100] ss:$8 sps:$4 sm:$0xff]  }
 0x28d   :  { %1661 = vmatprep.subr.bf16.mxu0 %v3183_v4  ;;  %1702 = vmatprep.subr.bf16.mxu1 %v3186_v5  ;;  %v3285_v4 = vld [vmem:[%s4397_s8 + $0x1f4] ss:$8 sps:$4 sm:$0xff]   ;;  %v3244_v5 = vld [vmem:[%s4397_s8 + $0xc0] ss:$8 sps:$4 sm:$0xff]  }
 0x290   :  { %1662 = vmatpush2.bf16.msra.mxu0 %v3181_v6  ;;  %1703 = vmatpush2.bf16.msra.mxu1 %v3184_v7  ;;  %v3249_v6 = vld [vmem:[%s4397_s8 + $0xb4] ss:$8 sps:$4 sm:$0xff]   ;;  %v3283_v7 = vld [vmem:[%s4397_s8 + $0x1f0] ss:$8 sps:$4 sm:$0xff]  }
 0x291   :  { %1663 = vmatprep.subr.bf16.mxu0 %v3189_v8  ;;  %1704 = vmatprep.subr.bf16.mxu1 %v3192_v9  ;;  %v3288_v8 = vld [vmem:[%s4397_s8 + $0x1e4] ss:$8 sps:$4 sm:$0xff]   ;;  %v3247_v9 = vld [vmem:[%s4397_s8 + $0xb0] ss:$8 sps:$4 sm:$0xff]  }
 0x294   :  { %1664 = vmatpush2.bf16.msra.mxu0 %v3187_v10  ;;  %1705 = vmatpush2.bf16.msra.mxu1 %v3190_v11  ;;  %v3252_v10 = vld [vmem:[%s4397_s8 + $0xa4] ss:$8 sps:$4 sm:$0xff]   ;;  %v3286_v11 = vld [vmem:[%s4397_s8 + $0x1e0] ss:$8 sps:$4 sm:$0xff]  }
 0x295   :  { %1665 = vmatprep.subr.bf16.mxu0 %v3195_v12  ;;  %1706 = vmatprep.subr.bf16.mxu1 %v3198_v13  ;;  %v3291_v12 = vld [vmem:[%s4397_s8 + $0x1d4] ss:$8 sps:$4 sm:$0xff]   ;;  %v3250_v13 = vld [vmem:[%s4397_s8 + $0xa0] ss:$8 sps:$4 sm:$0xff]  }
 0x298   :  { %1666 = vmatpush2.bf16.msra.mxu0 %v3193_v14  ;;  %1707 = vmatpush2.bf16.msra.mxu1 %v3196_v15  ;;  %v3255_v14 = vld [vmem:[%s4397_s8 + $0x94] ss:$8 sps:$4 sm:$0xff]   ;;  %v3289_v15 = vld [vmem:[%s4397_s8 + $0x1d0] ss:$8 sps:$4 sm:$0xff]  }
 0x299   :  { %1667 = vmatprep.subr.bf16.mxu0 %v3201_v16  ;;  %1708 = vmatprep.subr.bf16.mxu1 %v3204_v17  ;;  %v3294_v16 = vld [vmem:[%s4397_s8 + $0x1c4] ss:$8 sps:$4 sm:$0xff]   ;;  %v3253_v17 = vld [vmem:[%s4397_s8 + $0x90] ss:$8 sps:$4 sm:$0xff]  }
 0x29c   :  { %1668 = vmatpush2.bf16.msra.mxu0 %v3199_v18  ;;  %1709 = vmatpush2.bf16.msra.mxu1 %v3202_v19  ;;  %v3258_v18 = vld [vmem:[%s4397_s8 + $0x84] ss:$8 sps:$4 sm:$0xff]   ;;  %v3292_v19 = vld [vmem:[%s4397_s8 + $0x1c0] ss:$8 sps:$4 sm:$0xff]  }
 0x29d   :  { %1669 = vmatprep.subr.bf16.mxu0 %v3207_v20  ;;  %1710 = vmatprep.subr.bf16.mxu1 %v3210_v23  ;;  %v3297_v20 = vld [vmem:[%s4397_s8 + $0x1b4] ss:$8 sps:$4 sm:$0xff]   ;;  %v3256_v23 = vld [vmem:[%s4397_s8 + $0x80] ss:$8 sps:$4 sm:$0xff]  }
 0x2a0   :  { %1670 = vmatpush2.bf16.msra.mxu0 %v3205_v24  ;;  %1711 = vmatpush2.bf16.msra.mxu1 %v3208_v25  ;;  %v3295_v24 = vld [vmem:[%s4397_s8 + $0x1b0] ss:$8 sps:$4 sm:$0xff]   ;;  %v3300_v25 = vld [vmem:[%s4397_s8 + $0x1a4] ss:$8 sps:$4 sm:$0xff]  }
 0x2a1   :  { %2133 = vmatprep.subr.bf16.mxu0 %v3213_v26  ;;  %2174 = vmatprep.subr.bf16.mxu1 %v3261_v35  ;;  %v3298_v26 = vld [vmem:[%s4397_s8 + $0x1a0] ss:$8 sps:$4 sm:$0xff]  }
 0x2a3   :  { %1672 = vmatmul.mubr.bf16.vlgmr.msra.gmra.mxu0 %v3896_v21  ;;  %1713 = vmatmul.mubr.bf16.vlgmr.msra.gmra.mxu1 %v3898_v22  ;;  %v3222_v21 = vld [vmem:[%s4397_s8 + $0x44] ss:$8 sps:$4 sm:$0xff]   ;;  %v3220_v22 = vld [vmem:[%s4397_s8 + $0x40] ss:$8 sps:$4 sm:$0xff]  }
 0x2a4   :  { %2134 = vmatpush1.bf16.msra.mxu0 %v3211_v27  ;;  %2175 = vmatpush1.bf16.msra.mxu1 %v3259_v37  ;;  %v3303_v27 = vld [vmem:[%s4397_s8 + $0x194] ss:$8 sps:$4 sm:$0xff]  }
 0x2a5   :  { %2135 = vmatprep.subr.bf16.mxu0 %v3216_v28  ;;  %2176 = vmatprep.subr.bf16.mxu1 %v3264_v39  ;;  %v3301_v28 = vld [vmem:[%s4397_s8 + $0x190] ss:$8 sps:$4 sm:$0xff]  }
 0x2a8   :  { %2136 = vmatpush1.bf16.msra.mxu0 %v3214_v29  ;;  %2177 = vmatpush1.bf16.msra.mxu1 %v3262_v41  ;;  %v3306_v29 = vld [vmem:[%s4397_s8 + $0x184] ss:$8 sps:$4 sm:$0xff]  }
 0x2a9   :  { %2137 = vmatprep.subr.bf16.mxu0 %v3219_v30  ;;  %2178 = vmatprep.subr.bf16.mxu1 %v3267_v42  ;;  %v3304_v30 = vld [vmem:[%s4397_s8 + $0x180] ss:$8 sps:$4 sm:$0xff]  }
 0x2ac   :  { %2138 = vmatpush1.bf16.msra.mxu0 %v3217_v31  ;;  %2179 = vmatpush1.bf16.msra.mxu1 %v3265_v45  ;;  %v4276_v31 = vld [vmem:[#allocation2] sm:$0xff] }
 0x2ad   :  { %2139 = vmatprep.subr.bf16.mxu0 %v3222_v21  ;;  %2180 = vmatprep.subr.bf16.mxu1 %v3270_v46  ;;  %v767_v21 = vld [vmem:[%s4392_s3 + $0x7] sm:$0xf] }
 0x2b0   :  { %2140 = vmatpush1.bf16.msra.mxu0 %v3220_v22  ;;  %2181 = vmatpush1.bf16.msra.mxu1 %v3268_v49  ;;  %v900_v22 = vrot.slane %v767_v21, %v3677_v34 }
 0x2b1   :  { %2141 = vmatprep.subr.bf16.mxu0 %v3225_v32  ;;  %2182 = vmatprep.subr.bf16.mxu1 %v3273_v50  ;;  %v904_v32 = vrot.slane %v767_v21, %v3683_v36 }
 0x2b4   :  { %2142 = vmatpush1.bf16.msra.mxu0 %v3223_v38  ;;  %2183 = vmatpush1.bf16.msra.mxu1 %v3271_v53 }
 0x2b5   :  { %2143 = vmatprep.subr.bf16.mxu0 %v3228_v40  ;;  %2184 = vmatprep.subr.bf16.mxu1 %v3276_v55  ;;  %v908_v55 = vrot.slane %v767_v21, %v339_v54 }
 0x2b8   :  { %2144 = vmatpush1.bf16.msra.mxu0 %v3226_v43  ;;  %2185 = vmatpush1.bf16.msra.mxu1 %v3274_v59 }
 0x2b9   :  { %2145 = vmatprep.subr.bf16.mxu0 %v3231_v44  ;;  %2186 = vmatprep.subr.bf16.mxu1 %v3279_v60 }
 0x2bc   :  { %2146 = vmatpush1.bf16.msra.mxu0 %v3229_v47  ;;  %2187 = vmatpush1.bf16.msra.mxu1 %v3277_v63 }
 0x2bd   :  { %2147 = vmatprep.subr.bf16.mxu0 %v3234_v48  ;;  %2188 = vmatprep.subr.bf16.mxu1 %v3282_v0 }
 0x2c0   :  { %2148 = vmatpush1.bf16.msra.mxu0 %v3232_v51  ;;  %2189 = vmatpush1.bf16.msra.mxu1 %v3280_v3 }
 0x2c1   :  { %2149 = vmatprep.subr.bf16.mxu0 %v3237_v52  ;;  %2190 = vmatprep.subr.bf16.mxu1 %v3285_v4 }
 0x2c4   :  { %2150 = vmatpush2.bf16.msra.mxu0 %v3235_v57  ;;  %2191 = vmatpush2.bf16.msra.mxu1 %v3283_v7  ;;  %v912_v57 = vrot.slane %v767_v21, %v343_v56  ;;  %v3327_v21 = vld [vmem:[%s4399_s10 + $0x18] sm:$0xff]  }
 0x2c5   :  { %2151 = vmatprep.subr.bf16.mxu0 %v3240_v58  ;;  %2192 = vmatprep.subr.bf16.mxu1 %v3288_v8 }
 0x2c8   :  { %2152 = vmatpush2.bf16.msra.mxu0 %v3238_v61  ;;  %2193 = vmatpush2.bf16.msra.mxu1 %v3286_v11  ;;  %v3309_v11 = vld [vmem:[%s4398_s9 + $0x70] sm:$0xff]  }
 0x2c9   :  { %2153 = vmatprep.subr.bf16.mxu0 %v3243_v62  ;;  %2194 = vmatprep.subr.bf16.mxu1 %v3291_v12  ;;  %v3310_v12 = vld [vmem:[%s4398_s9 + $0x30] sm:$0xff]  }
 0x2cc   :  { %2154 = vmatpush2.bf16.msra.mxu0 %v3241_v1  ;;  %2195 = vmatpush2.bf16.msra.mxu1 %v3289_v15  ;;  %v3313_v15 = vld [vmem:[%s4398_s9 + $0x60] sm:$0xff]  }
 0x2cd   :  { %2155 = vmatprep.subr.bf16.mxu0 %v3246_v2  ;;  %2196 = vmatprep.subr.bf16.mxu1 %v3294_v16  ;;  %v3314_v16 = vld [vmem:[%s4398_s9 + $0x20] sm:$0xff]  }
 0x2d0   :  { %2156 = vmatpush2.bf16.msra.mxu0 %v3244_v5  ;;  %2197 = vmatpush2.bf16.msra.mxu1 %v3292_v19  ;;  %v3317_v19 = vld [vmem:[%s4398_s9 + $0x50] sm:$0xff]  }
 0x2d1   :  { %2157 = vmatprep.subr.bf16.mxu0 %v3249_v6  ;;  %2198 = vmatprep.subr.bf16.mxu1 %v3297_v20  ;;  %v3318_v20 = vld [vmem:[%s4398_s9 + $0x10] sm:$0xff]  }
 0x2d4   :  { %2158 = vmatpush2.bf16.msra.mxu0 %v3247_v9  ;;  %2199 = vmatpush2.bf16.msra.mxu1 %v3295_v24  ;;  %v3307_v9 = vld [vmem:[%s4398_s9 + $0x78] sm:$0xff]   ;;  %v3320_v24 = vld [vmem:[%s4398_s9 + $0x8] sm:$0xff]  }
 0x2d5   :  { %2159 = vmatprep.subr.bf16.mxu0 %v3252_v10  ;;  %2200 = vmatprep.subr.bf16.mxu1 %v3300_v25  ;;  %v3308_v10 = vld [vmem:[%s4398_s9 + $0x38] sm:$0xff]   ;;  %v3321_v25 = vld [vmem:[%s4398_s9 + $0x40] sm:$0xff]  }
 0x2d8   :  { %2160 = vmatpush2.bf16.msra.mxu0 %v3250_v13  ;;  %2201 = vmatpush2.bf16.msra.mxu1 %v3298_v26  ;;  %v3311_v13 = vld [vmem:[%s4398_s9 + $0x68] sm:$0xff]   ;;  %v3322_v26 = vld [vmem:[%s4398_s9] sm:$0xff]  }
 0x2d9   :  { %2161 = vmatprep.subr.bf16.mxu0 %v3255_v14  ;;  %2202 = vmatprep.subr.bf16.mxu1 %v3303_v27  ;;  %v3312_v14 = vld [vmem:[%s4398_s9 + $0x28] sm:$0xff]   ;;  %v3323_v27 = vld [vmem:[%s4399_s10 + $0x38] sm:$0xff]  }
 0x2dc   :  { %2162 = vmatpush2.bf16.msra.mxu0 %v3253_v17  ;;  %2203 = vmatpush2.bf16.msra.mxu1 %v3301_v28  ;;  %v3315_v17 = vld [vmem:[%s4398_s9 + $0x58] sm:$0xff]   ;;  %v3324_v28 = vld [vmem:[%s4399_s10 + $0x30] sm:$0xff]  }
 0x2dd   :  { %2163 = vmatprep.subr.bf16.mxu0 %v3258_v18  ;;  %2204 = vmatprep.subr.bf16.mxu1 %v3306_v29  ;;  %v3316_v18 = vld [vmem:[%s4398_s9 + $0x18] sm:$0xff]   ;;  %v3325_v29 = vld [vmem:[%s4399_s10 + $0x28] sm:$0xff]  }
 0x2e0   :  { %2164 = vmatpush2.bf16.msra.mxu0 %v3256_v23  ;;  %2205 = vmatpush2.bf16.msra.mxu1 %v3304_v30  ;;  %v3319_v23 = vld [vmem:[%s4398_s9 + $0x48] sm:$0xff]   ;;  %v3326_v30 = vld [vmem:[%s4399_s10 + $0x20] sm:$0xff]  }
 0x2e1   :  { %2874 = vmatprep.subr.bf16.mxu1 %v4276_v31  ;;  %2837 = vmatprep.subr.bf16.mxu0 %v3307_v9 }
 0x323   :  { %v1591_v35 = vpop.f32.mrf.mxu0  ;;  %v1632_v37 = vpop.f32.mrf.mxu1 }
 0x324   :  { %v1592_v38 = vadd.f32 %v1591_v35, %v900_v22 }
 0x325   :  { %v1593_v39 = vpop.f32.mrf.mxu0  ;;  %v1634_v40 = vpop.f32.mrf.mxu1 }
 0x326   :  { %v1633_v41 = vadd.f32 %v1632_v37, %v1592_v38  ;;  %v1594_v42 = vadd.f32 %v1593_v39, %v904_v32  ;;  %v1737_v38 = vld [vmem:[%s4392_s3 + $0xb] sm:$0x3] }
 0x327   :  { %v1595_v43 = vpop.f32.mrf.mxu0  ;;  %v1636_v44 = vpop.f32.mrf.mxu1  ;;  %v1806_v39 = vrot.slane %v1737_v38, %v3677_v34  ;;  %v3328_v34 = vld [vmem:[%s4399_s10 + $0x10] sm:$0xff]  }
 0x328   :  { %v1721_v45 = vpack.c.bf16 %v1633_v41, %v1633_v41  ;;  %v1635_v46 = vadd.f32 %v1634_v40, %v1594_v42  ;;  %v1810_v40 = vrot.slane %v1737_v38, %v3683_v36  ;;  %v3329_v36 = vld [vmem:[%s4399_s10 + $0x8] sm:$0xff]  }
 0x329   :  { %v1596_v47 = vpop.f32.mrf.mxu0  ;;  %v1637_v48 = vpop.f32.mrf.mxu1 }
 0x32a   :  { %v1722_v49 = vpack.c.bf16 %v1635_v46, %v1635_v46  ;;  %v1729_v50 = vmul.bf16 1045249613, %v1721_v45  ;;  %vm1725_vm9 = vcmp.gt.bf16.partialorder %v1721_v45, 0 }
 0x32c   :  { %v1730_v51 = vmul.bf16 1045249613, %v1722_v49  ;;  %vm1726_vm10 = vcmp.gt.bf16.partialorder %v1722_v49, 0  ;;  %v1733_v53 = vsel %vm1725_vm9, %v1721_v45, %v1729_v50 }
 0x32e   :  { %v1734_v52 = vsel %vm1726_vm10, %v1722_v49, %v1730_v51 }
 0x32f   :  { %2165 = vmatprep.mubr.bf16.mxu0 %v1734_v52 }
 0x330   :  { %2166 = vmatmul.mubr.bf16.vlgmr.msra.gmra.mxu0 %v1733_v53 }
 0x331   :  { %2838 = vmatpush3.bf16.msra.mxu0 %v3308_v10 }
 0x332   :  { %2839 = vmatprep.subr.bf16.mxu0 %v3309_v11 }
 0x335   :  { %2840 = vmatpush3.bf16.msra.mxu0 %v3310_v12 }
 0x336   :  { %2841 = vmatprep.subr.bf16.mxu0 %v3311_v13 }
 0x339   :  { %2842 = vmatpush3.bf16.msra.mxu0 %v3312_v14 }
 0x33a   :  { %2843 = vmatprep.subr.bf16.mxu0 %v3313_v15 }
 0x33d   :  { %2844 = vmatpush3.bf16.msra.mxu0 %v3314_v16 }
 0x33e   :  { %2845 = vmatprep.subr.bf16.mxu0 %v3315_v17 }
 0x341   :  { %2846 = vmatpush3.bf16.msra.mxu0 %v3316_v18 }
 0x342   :  { %2847 = vmatprep.subr.bf16.mxu0 %v3317_v19 }
 0x345   :  { %2848 = vmatpush3.bf16.msra.mxu0 %v3318_v20 }
 0x346   :  { %2849 = vmatprep.subr.bf16.mxu0 %v3319_v23 }
 0x349   :  { %2850 = vmatpush3.bf16.msra.mxu0 %v3320_v24 }
 0x34a   :  { %2851 = vmatprep.subr.bf16.mxu0 %v3321_v25 }
 0x34d   :  { %2852 = vmatpush3.bf16.msra.mxu0 %v3322_v26 }
 0x363   :  { %v1673_v58 = vpop.f32.mrf.mxu0  ;;  %v1714_v59 = vpop.f32.mrf.mxu1 }
 0x364   :  { %v1674_v60 = vadd.f32 %v1673_v58, %v908_v55 }
 0x365   :  { %v1675_v61 = vpop.f32.mrf.mxu0  ;;  %v1716_v62 = vpop.f32.mrf.mxu1 }
 0x366   :  { %v1715_v63 = vadd.f32 %v1714_v59, %v1674_v60  ;;  %v1676_v0 = vadd.f32 %v1675_v61, %v912_v57  ;;  %v3330_v57 = vld [vmem:[%s4399_s10] sm:$0xff]   ;;  %v2809_v59 = vld [vmem:[%s4392_s3 + $0xd] ss:$0 sm:$0xff] }
 0x367   :  { %v1677_v1 = vpop.f32.mrf.mxu0  ;;  %v1718_v2 = vpop.f32.mrf.mxu1 }
 0x368   :  { %v1723_v3 = vpack.c.bf16 %v1715_v63, %v1715_v63  ;;  %v1717_v4 = vadd.f32 %v1716_v62, %v1676_v0 }
 0x369   :  { %v1678_v5 = vpop.f32.mrf.mxu0  ;;  %v1719_v6 = vpop.f32.mrf.mxu1 }
 0x36a   :  { %v1724_v7 = vpack.c.bf16 %v1717_v4, %v1717_v4  ;;  %v1731_v8 = vmul.bf16 1045249613, %v1723_v3  ;;  %vm1727_vm11 = vcmp.gt.bf16.partialorder %v1723_v3, 0  ;;  %v2513_v5 = vld [vmem:[%s4391_s2] sm:$0xff] }
 0x36c   :  { %v1732_v54 = vmul.bf16 1045249613, %v1724_v7  ;;  %vm1728_vm12 = vcmp.gt.bf16.partialorder %v1724_v7, 0  ;;  %v1735_v56 = vsel %vm1727_vm11, %v1723_v3, %v1731_v8 }
 0x36e   :  { %v1736_v33 = vsel %vm1728_vm12, %v1724_v7, %v1732_v54  ;;  %v2515_v7 = vld [vmem:[%s4390_s1] sm:$0xff] }
 0x36f   :  { %2206 = vmatprep.mubr.bf16.mxu1 %v1736_v33 }
 0x370   :  { %2207 = vmatmul.mubr.bf16.vlgmr.msra.gmra.mxu1 %v1735_v56 }
 0x371   :  { %2890 = vmatprep.mubr.msk.bf16.mxu1 %vm3355_vm0, %v4276_v31  ;;  %2875 = vmatpush3.bf16.msra.mxu1 %v3323_v27  ;;  %vm2518_vm0 = vcmask 195584  }
 0x372   :  { %2876 = vmatprep.subr.bf16.mxu1 %v4276_v31 }
 0x375   :  { %2877 = vmatpush3.bf16.msra.mxu1 %v3324_v28 }
 0x376   :  { %2878 = vmatprep.subr.bf16.mxu1 %v4276_v31 }
 0x379   :  { %2879 = vmatpush3.bf16.msra.mxu1 %v3325_v29 }
 0x37a   :  { %2880 = vmatprep.subr.bf16.mxu1 %v4276_v31 }
 0x37d   :  { %2881 = vmatpush3.bf16.msra.mxu1 %v3326_v30 }
 0x37e   :  { %2882 = vmatprep.subr.bf16.mxu1 %v4276_v31 }
 0x381   :  { %2883 = vmatpush3.bf16.msra.mxu1 %v3327_v21 }
 0x382   :  { %2884 = vmatprep.subr.bf16.mxu1 %v4276_v31 }
 0x385   :  { %2885 = vmatpush3.bf16.msra.mxu1 %v3328_v34 }
 0x386   :  { %2886 = vmatprep.subr.bf16.mxu1 %v4276_v31 }
 0x389   :  { %2887 = vmatpush3.bf16.msra.mxu1 %v3329_v36 }
 0x38a   :  { %2888 = vmatprep.subr.bf16.mxu1 %v4276_v31  ;;  %v2826_v31 = vld [vmem:[%s4392_s3 + $0xe] ss:$0 sm:$0xff]  ;;  %s3332_s3 = scalar_lea.vmem %s2527_s27, 128 }
 0x38b   :  { %p3333_p0 = scmp.ne.s32.totalorder %s2527_s27, %s3332_s3  ;;  %p3338_p2 = scmp.lt.s32.totalorder %s3332_s3, %s3332_s3 }
 0x38d   :  { %2889 = vmatpush3.bf16.msra.mxu1 %v3330_v57  ;;  %p3339_p3 = por %p3338_p2, %p3337_p1 }
 0x38f   :  { %p3340_p4 = pnand %p3339_p3, %p3333_p0 }
 0x3f0   :  { %v2167_v22 = vpop.f32.mrf.mxu0 }
 0x3f1   :  { %v2168_v41 = vadd.f32 %v2167_v22, %v1806_v39 }
 0x3f2   :  { %v2169_v32 = vpop.f32.mrf.mxu0 }
 0x3f3   :  { %v2170_v43 = vadd.f32 %v2169_v32, %v1810_v40 }
 0x3f4   :  { %v2171_v35 = vpop.f32.mrf.mxu0 }
 0x3f6   :  { %v2172_v37 = vpop.f32.mrf.mxu0 }
 0x430   :  { %v2208_v42 = vpop.f32.mrf.mxu1 }
 0x431   :  { %v2209_v44 = vadd.f32 %v2208_v42, %v2168_v41 }
 0x432   :  { %v2210_v45 = vpop.f32.mrf.mxu1 }
 0x433   :  { %v2215_v46 = vpack.c.bf16 %v2209_v44, %v2209_v44  ;;  %v2211_v47 = vadd.f32 %v2210_v45, %v2170_v43 }
 0x434   :  { %v2212_v48 = vpop.f32.mrf.mxu1 }
 0x435   :  { %v2216_v49 = vpack.c.bf16 %v2211_v47, %v2211_v47  ;;  %v2219_v50 = vmul.bf16 1045249613, %v2215_v46  ;;  %vm2217_vm13 = vcmp.gt.bf16.partialorder %v2215_v46, 0 }
 0x436   :  { %v2213_v51 = vpop.f32.mrf.mxu1 }
 0x437   :  { %v2220_v52 = vmul.bf16 1045249613, %v2216_v49  ;;  %vm2218_vm14 = vcmp.gt.bf16.partialorder %v2216_v49, 0  ;;  %v2221_v55 = vsel %vm2217_vm13, %v2215_v46, %v2219_v50 }
 0x439   :  { %v2222_v53 = vsel %vm2218_vm14, %v2216_v49, %v2220_v52 }
 0x43a   :  { %2390 = vmatprep.mubr.bf16.mxu0 %v2222_v53 }
 0x43b   :  { %2391 = vmatmul.mubr.bf16.vlgmr.msra.gmra.mxu0 %v2221_v55 }
 0x4fb   :  { %v2853_v58 = vpop.f32.mrf.mxu0 }
 0x4fd   :  { %v2854_v60 = vpop.f32.mrf.mxu0 }
 0x4fe   :  { %v2855_v61 = vadd.f32 %v2854_v60, %v2853_v58 }
 0x4ff   :  { %v2856_v62 = vpop.f32.mrf.mxu0 }
 0x500   :  { %v2393_v63 = vadd.f32 %v2855_v61, %v2809_v59 }
 0x501   :  { %v2857_v0 = vpop.f32.mrf.mxu0 }
 0x502   :  { %v2398_v1 = vpack.c.bf16 %v2393_v63, %v2393_v63 }
 0x504   :  { %v2400_v2 = vmul.bf16 1045249613, %v2398_v1  ;;  %vm2399_vm15 = vcmp.gt.bf16.partialorder %v2398_v1, 0 }
 0x506   :  { %v2401_v3 = vsel %vm2399_vm15, %v2398_v1, %v2400_v2 }
 0x507   :  { %2891 = vmatmul.mubr.bf16.vlgmr.msra.gmra.mxu1 %v2401_v3 }
 0x5c7   :  { %v2507_v4 = vpop.f32.mrf.mxu1 }
 0x5c8   :  { %v2508_v6 = vadd.f32 %v2826_v31, %v2507_v4 }
 0x5c9   :  { %v2892_v8 = vpop.f32.mrf.mxu1 }
 0x5ca   :  { %v2514_v54 = vmul.f32 %v2513_v5, %v2508_v6 }
 0x5cb   :  { %v2510_v33 = vpop.f32.mrf.mxu1 }
 0x5cc   :  { %v2516_v56 = vadd.f32 %v2515_v7, %v2514_v54 }
 0x5cd   :  { %v2893_v9 = vpop.f32.mrf.mxu1 }
 0x5ce   :  { %2519 = vst.msk [vmem:[#allocation2] sm:$0xff] %vm2518_vm0, %v2516_v56 }
 0x5cf   :  { %3343 = shalt.err (!%p3340_p4)
}
 0x5d0   :  { %2529 = dma.vmem_to_hbm [thread:$0]  %s2527_s27, 128, %s4400_s11, [#allocation3]  }
 0x5d1   :  { %3352 = dma.done.wait [#allocation3], 128  }
 0x5d2   :  { %3353 = vsyncadd [#allocation3], 4294967168 }
 0x5d3   :  { %2533 = vsyncpa [#allocation3], 1 }

</bundles_post_ra>
